<compile_context>
chip_gen: v7x
topology: tpu7x:2x2x1
jax: 0.10.0
libtpu: 0.0.40
codegen_flags: <defaults>
</compile_context>

<pallas_src>
import functools

import jax
import jax.numpy as jnp
from jax import lax
from jax.experimental import pallas as pl
from jax.experimental.pallas import tpu as pltpu

EPS = 1e-5


def _bn_train(x, gamma=None, beta=None):
    """BatchNorm1d, training mode (batch stats, biased variance, eps=1e-5).

    Each grid program holds exactly one view's rows, so the required per-view
    statistics are simply statistics over the whole block.  Variance is done
    in one pass (E[x^2] - mean^2); the two reductions are independent.
    """
    mean = jnp.mean(x, axis=0, keepdims=True)
    var = jnp.mean(x * x, axis=0, keepdims=True) - mean * mean
    y = (x - mean) * lax.rsqrt(var + EPS)
    if gamma is not None:
        y = y * gamma + beta
    return y


# -----------------------------------------------------------------------------
# Fused kernel: stem -> projection head -> predictor (one view per program)
# -----------------------------------------------------------------------------
def simsiam_kernel(x_ref, stem_w_ref,
                   fc1_w_ref, bn1_g_ref, bn1_b_ref,
                   fc2_w_ref, bn2_g_ref, bn2_b_ref,
                   fc3_w_ref,
                   pr1_w_ref, pbn_g_ref, pbn_b_ref,
                   pr2_w_ref, pr2_b_ref,
                   z_ref, q_ref,
                   *, batch, hw_p):
    # ---- synthetic backbone stem: patch embedding (lane-dense K) + ReLU ----
    # x rows are patch-major: row p*batch + b = patch p of image b.
    # TODO(synk): base_encoder is an injected ResNet in the original module;
    # this patch-embedding + ReLU + global-average-pool trunk stands in.
    h = jnp.dot(x_ref[...], stem_w_ref[...],
                preferred_element_type=jnp.float32)
    h = jnp.maximum(h, 0.0)                       # (hw_p*B, prev_dim) f32

    # ---- global average pool over patches: unrolled sum of static,
    # sublane-aligned (B, prev_dim) slices (VPU adds; no pooling matmul). ----
    f = h[0:batch]
    for p in range(1, hw_p):                      # hw_p is small & static
        f = f + h[p * batch:(p + 1) * batch]
    f = f * jnp.float32(1.0 / hw_p)               # (B, prev_dim)

    # ---- projection head: Lin -> BN -> ReLU -> Lin -> BN -> ReLU
    #      -> Lin -> BN(affine=False).  fc3's bias is omitted: a per-feature
    #      constant right before an affine-free BN cancels exactly. ----------
    h1 = jnp.dot(f.astype(jnp.bfloat16), fc1_w_ref[...],
                 preferred_element_type=jnp.float32)
    h1 = jnp.maximum(_bn_train(h1, bn1_g_ref[...], bn1_b_ref[...]), 0.0)
    h2 = jnp.dot(h1.astype(jnp.bfloat16), fc2_w_ref[...],
                 preferred_element_type=jnp.float32)
    h2 = jnp.maximum(_bn_train(h2, bn2_g_ref[...], bn2_b_ref[...]), 0.0)
    z = jnp.dot(h2.astype(jnp.bfloat16), fc3_w_ref[...],
                preferred_element_type=jnp.float32)
    z = _bn_train(z)                              # affine=False
    z_ref[...] = z

    # ---- predictor: Lin -> BN -> ReLU -> Lin(+bias) ------------------------
    g = jnp.dot(z.astype(jnp.bfloat16), pr1_w_ref[...],
                preferred_element_type=jnp.float32)
    g = jnp.maximum(_bn_train(g, pbn_g_ref[...], pbn_b_ref[...]), 0.0)
    q_ref[...] = (jnp.dot(g.astype(jnp.bfloat16), pr2_w_ref[...],
                          preferred_element_type=jnp.float32)
                  + pr2_b_ref[...])


# -----------------------------------------------------------------------------
# Parameters (deterministic, synthetic). Weights in bf16, BN params in f32.
# -----------------------------------------------------------------------------
def init_params(key, patch_in, prev_dim, dim, pred_dim):
    ks = jax.random.split(key, 7)
    scale = lambda fan_in: 1.0 / jnp.sqrt(jnp.float32(fan_in))
    w = lambda k, shp, fi: (jax.random.normal(k, shp, jnp.float32)
                            * scale(fi)).astype(jnp.bfloat16)
    p = {}
    p["stem_w"] = w(ks[0], (patch_in, prev_dim), patch_in)
    p["fc1_w"] = w(ks[1], (prev_dim, prev_dim), prev_dim)
    p["bn1_g"] = jnp.ones((1, prev_dim), jnp.float32)
    p["bn1_b"] = jnp.zeros((1, prev_dim), jnp.float32)
    p["fc2_w"] = w(ks[2], (prev_dim, prev_dim), prev_dim)
    p["bn2_g"] = jnp.ones((1, prev_dim), jnp.float32)
    p["bn2_b"] = jnp.zeros((1, prev_dim), jnp.float32)
    p["fc3_w"] = w(ks[3], (prev_dim, dim), prev_dim)
    p["pr1_w"] = w(ks[4], (dim, pred_dim), dim)
    p["pbn_g"] = jnp.ones((1, pred_dim), jnp.float32)
    p["pbn_b"] = jnp.zeros((1, pred_dim), jnp.float32)
    p["pr2_w"] = w(ks[5], (pred_dim, dim), pred_dim)
    p["pr2_b"] = (jax.random.normal(ks[6], (1, dim), jnp.float32)
                  * scale(pred_dim))
    return p


# -----------------------------------------------------------------------------
# Forward pass
# -----------------------------------------------------------------------------
def _pack_view(x, patch):
    """(B, C, H, W) -> (hw_p*B, patch*C) bf16, patch-major rows (XLA layout)."""
    B, C, H, W = x.shape
    hw_p = (H * W) // patch
    x = jnp.transpose(x, (0, 2, 3, 1)).reshape(B, hw_p, patch * C)
    x = jnp.transpose(x, (1, 0, 2)).reshape(hw_p * B, patch * C)
    return x.astype(jnp.bfloat16)


def simsiam_forward(x1, x2, params, patch):
    B, C, H, W = x1.shape
    assert B % 8 == 0, "batch must be a multiple of 8 (f32 sublane alignment)"
    assert (H * W) % patch == 0
    hw_p = (H * W) // patch
    patch_in, prev_dim = params["stem_w"].shape
    assert patch_in == patch * C
    dim = params["fc3_w"].shape[1]
    pred_dim = params["pr1_w"].shape[1]
    rows = hw_p * B

    # Views stacked on axis 0; grid program v handles view v.
    x = jnp.concatenate([_pack_view(x1, patch), _pack_view(x2, patch)], axis=0)

    const2 = lambda v: (0, 0)
    full = lambda shape: pl.BlockSpec(shape, const2)

    kernel = functools.partial(simsiam_kernel, batch=B, hw_p=hw_p)
    z, q = pl.pallas_call(
        kernel,
        grid=(2,),                                 # one program per view
        out_shape=(jax.ShapeDtypeStruct((2 * B, dim), jnp.float32),
                   jax.ShapeDtypeStruct((2 * B, dim), jnp.float32)),
        in_specs=[
            pl.BlockSpec((rows, patch_in), lambda v: (v, 0)),   # x (per view)
            full((patch_in, prev_dim)),                         # stem_w
            full((prev_dim, prev_dim)), full((1, prev_dim)), full((1, prev_dim)),
            full((prev_dim, prev_dim)), full((1, prev_dim)), full((1, prev_dim)),
            full((prev_dim, dim)),
            full((dim, pred_dim)), full((1, pred_dim)), full((1, pred_dim)),
            full((pred_dim, dim)), full((1, dim)),
        ],
        out_specs=(pl.BlockSpec((B, dim), lambda v: (v, 0)),
                   pl.BlockSpec((B, dim), lambda v: (v, 0))),
        compiler_params=pltpu.CompilerParams(
            dimension_semantics=("parallel",),
            vmem_limit_bytes=16 * 1024 * 1024),
        # TODO(synk): at real SimSiam dims (prev_dim=dim=2048, pred_dim=512),
        # add a K-tiled grid axis for fc1/fc2 with an f32 VMEM accumulator so
        # weights stream HBM->VMEM double-buffered instead of staying resident.
    )(x, params["stem_w"],
      params["fc1_w"], params["bn1_g"], params["bn1_b"],
      params["fc2_w"], params["bn2_g"], params["bn2_b"],
      params["fc3_w"],
      params["pr1_w"], params["pbn_g"], params["pbn_b"],
      params["pr2_w"], params["pr2_b"])

    z1, z2 = z[:B], z[B:]
    # q rows = [predictor(z1); predictor(z2)].  The reference module returns
    # p1 = predictor(z2), p2 = predictor(z1) (crossed), so map accordingly.
    p1, p2 = q[B:], q[:B]
    # .detach() -> stop_gradient (no-op in this forward-only computation).
    return p1, p2, lax.stop_gradient(z1), lax.stop_gradient(z2)


if __name__ == "__main__":
    # Small, lane-dense toy config (real SimSiam: prev_dim=dim=2048, pred=512).
    # B is a multiple of 8 so view blocks stay sublane-aligned; at real scale
    # use B >= 128 per view to fill the MXU M dimension.
    B, C, H, W = 16, 4, 16, 16
    PATCH = 32                                   # 32 px * 4 ch = 128-lane K
    prev_dim, dim, pred_dim = 256, 128, 128

    key = jax.random.PRNGKey(0)
    k_params, k1, k2 = jax.random.split(key, 3)
    params = init_params(k_params, PATCH * C, prev_dim, dim, pred_dim)

    x1 = jax.random.normal(k1, (B, C, H, W), jnp.float32)
    x2 = jax.random.normal(k2, (B, C, H, W), jnp.float32)

    p1, p2, z1, z2 = simsiam_forward(x1, x2, params, PATCH)
    jax.block_until_ready((p1, p2, z1, z2))

    assert p1.shape == (B, dim) and p2.shape == (B, dim)
    assert z1.shape == (B, dim) and z2.shape == (B, dim)
    assert bool(jnp.all(jnp.isfinite(p1))) and bool(jnp.all(jnp.isfinite(z1)))
    print("KERNEL_OK")
</pallas_src>

<mosaic_0001>
module attributes {stable_mosaic.version = 11 : i64} {
  func.func @simsiam_kernel(%arg0: i32, %arg1: memref<128x128xbf16, #tpu.memory_space<vmem>>, %arg2: memref<128x256xbf16, #tpu.memory_space<vmem>>, %arg3: memref<256x256xbf16, #tpu.memory_space<vmem>>, %arg4: memref<1x256xf32, #tpu.memory_space<vmem>>, %arg5: memref<1x256xf32, #tpu.memory_space<vmem>>, %arg6: memref<256x256xbf16, #tpu.memory_space<vmem>>, %arg7: memref<1x256xf32, #tpu.memory_space<vmem>>, %arg8: memref<1x256xf32, #tpu.memory_space<vmem>>, %arg9: memref<256x128xbf16, #tpu.memory_space<vmem>>, %arg10: memref<128x128xbf16, #tpu.memory_space<vmem>>, %arg11: memref<1x128xf32, #tpu.memory_space<vmem>>, %arg12: memref<1x128xf32, #tpu.memory_space<vmem>>, %arg13: memref<128x128xbf16, #tpu.memory_space<vmem>>, %arg14: memref<1x128xf32, #tpu.memory_space<vmem>>, %arg15: memref<16x128xf32, #tpu.memory_space<vmem>>, %arg16: memref<16x128xf32, #tpu.memory_space<vmem>>) attributes {dimension_semantics = [#tpu.dimension_semantics<parallel>], iteration_bounds = array<i64: 2>, scalar_prefetch = 0 : i64, scratch_operands = 0 : i64, tpu.core_type = #tpu.core_type<tc>, window_params = [{transform_indices = @transform_0, window_bounds = array<i64: 128, 128>}, {pipeline_mode = #tpu.pipeline_mode<synchronous>, transform_indices = @transform_1, window_bounds = array<i64: 128, 256>}, {pipeline_mode = #tpu.pipeline_mode<synchronous>, transform_indices = @transform_2, window_bounds = array<i64: 256, 256>}, {pipeline_mode = #tpu.pipeline_mode<synchronous>, transform_indices = @transform_3, window_bounds = array<i64: 1, 256>}, {pipeline_mode = #tpu.pipeline_mode<synchronous>, transform_indices = @transform_4, window_bounds = array<i64: 1, 256>}, {pipeline_mode = #tpu.pipeline_mode<synchronous>, transform_indices = @transform_5, window_bounds = array<i64: 256, 256>}, {pipeline_mode = #tpu.pipeline_mode<synchronous>, transform_indices = @transform_6, window_bounds = array<i64: 1, 256>}, {pipeline_mode = #tpu.pipeline_mode<synchronous>, transform_indices = @transform_7, window_bounds = array<i64: 1, 256>}, {pipeline_mode = #tpu.pipeline_mode<synchronous>, transform_indices = @transform_8, window_bounds = array<i64: 256, 128>}, {pipeline_mode = #tpu.pipeline_mode<synchronous>, transform_indices = @transform_9, window_bounds = array<i64: 128, 128>}, {pipeline_mode = #tpu.pipeline_mode<synchronous>, transform_indices = @transform_10, window_bounds = array<i64: 1, 128>}, {pipeline_mode = #tpu.pipeline_mode<synchronous>, transform_indices = @transform_11, window_bounds = array<i64: 1, 128>}, {pipeline_mode = #tpu.pipeline_mode<synchronous>, transform_indices = @transform_12, window_bounds = array<i64: 128, 128>}, {pipeline_mode = #tpu.pipeline_mode<synchronous>, transform_indices = @transform_13, window_bounds = array<i64: 1, 128>}, {transform_indices = @transform_14, window_bounds = array<i64: 16, 128>}, {transform_indices = @transform_15, window_bounds = array<i64: 16, 128>}]} {
    %c0 = arith.constant 0 : index
    %c0_0 = arith.constant 0 : index
    %0 = vector.load %arg1[%c0, %c0_0] : memref<128x128xbf16, #tpu.memory_space<vmem>>, vector<128x128xbf16>
    %c0_1 = arith.constant 0 : index
    %c0_2 = arith.constant 0 : index
    %1 = vector.load %arg2[%c0_1, %c0_2] : memref<128x256xbf16, #tpu.memory_space<vmem>>, vector<128x256xbf16>
    %cst = arith.constant dense<0.000000e+00> : vector<128x256xf32>
    %2 = tpu.matmul %0, %1, %cst {dimension_numbers = #tpu.dot_dimension_numbers<[1], [0], [0], [1], [0, 0, 1, 1], [], []>} : vector<128x128xbf16>, vector<128x256xbf16>, vector<128x256xf32> -> vector<128x256xf32>
    %cst_3 = arith.constant 0.000000e+00 : f32
    %3 = vector.broadcast %cst_3 : f32 to vector<128x256xf32>
    %4 = arith.maximumf %2, %3 : vector<128x256xf32>
    %5 = vector.extract_strided_slice %4 {offsets = [0, 0], sizes = [16, 256], strides = [1, 1]} : vector<128x256xf32> to vector<16x256xf32>
    %6 = vector.extract_strided_slice %4 {offsets = [16, 0], sizes = [16, 256], strides = [1, 1]} : vector<128x256xf32> to vector<16x256xf32>
    %7 = arith.addf %5, %6 : vector<16x256xf32>
    %8 = vector.extract_strided_slice %4 {offsets = [32, 0], sizes = [16, 256], strides = [1, 1]} : vector<128x256xf32> to vector<16x256xf32>
    %9 = arith.addf %7, %8 : vector<16x256xf32>
    %10 = vector.extract_strided_slice %4 {offsets = [48, 0], sizes = [16, 256], strides = [1, 1]} : vector<128x256xf32> to vector<16x256xf32>
    %11 = arith.addf %9, %10 : vector<16x256xf32>
    %12 = vector.extract_strided_slice %4 {offsets = [64, 0], sizes = [16, 256], strides = [1, 1]} : vector<128x256xf32> to vector<16x256xf32>
    %13 = arith.addf %11, %12 : vector<16x256xf32>
    %14 = vector.extract_strided_slice %4 {offsets = [80, 0], sizes = [16, 256], strides = [1, 1]} : vector<128x256xf32> to vector<16x256xf32>
    %15 = arith.addf %13, %14 : vector<16x256xf32>
    %16 = vector.extract_strided_slice %4 {offsets = [96, 0], sizes = [16, 256], strides = [1, 1]} : vector<128x256xf32> to vector<16x256xf32>
    %17 = arith.addf %15, %16 : vector<16x256xf32>
    %18 = vector.extract_strided_slice %4 {offsets = [112, 0], sizes = [16, 256], strides = [1, 1]} : vector<128x256xf32> to vector<16x256xf32>
    %19 = arith.addf %17, %18 : vector<16x256xf32>
    %cst_4 = arith.constant 1.250000e-01 : f32
    %20 = vector.broadcast %cst_4 : f32 to vector<16x256xf32>
    %21 = arith.mulf %19, %20 : vector<16x256xf32>
    %22 = arith.truncf %21 : vector<16x256xf32> to vector<16x256xbf16>
    %c0_5 = arith.constant 0 : index
    %c0_6 = arith.constant 0 : index
    %23 = vector.load %arg3[%c0_5, %c0_6] : memref<256x256xbf16, #tpu.memory_space<vmem>>, vector<256x256xbf16>
    %cst_7 = arith.constant dense<0.000000e+00> : vector<16x256xf32>
    %24 = tpu.matmul %22, %23, %cst_7 {dimension_numbers = #tpu.dot_dimension_numbers<[1], [0], [0], [1], [0, 0, 1, 1], [], []>} : vector<16x256xbf16>, vector<256x256xbf16>, vector<16x256xf32> -> vector<16x256xf32>
    %c0_8 = arith.constant 0 : index
    %c0_9 = arith.constant 0 : index
    %25 = vector.load %arg4[%c0_8, %c0_9] : memref<1x256xf32, #tpu.memory_space<vmem>>, vector<1x256xf32>
    %c0_10 = arith.constant 0 : index
    %c0_11 = arith.constant 0 : index
    %26 = vector.load %arg5[%c0_10, %c0_11] : memref<1x256xf32, #tpu.memory_space<vmem>>, vector<1x256xf32>
    %cst_12 = arith.constant dense<0.000000e+00> : vector<256xf32>
    %27 = vector.multi_reduction <add>, %24, %cst_12 [0] : vector<16x256xf32> to vector<256xf32>
    %28 = vector.shape_cast %27 : vector<256xf32> to vector<1x256xf32>
    %cst_13 = arith.constant 1.600000e+01 : f32
    %29 = vector.broadcast %cst_13 : f32 to vector<1x256xf32>
    %30 = arith.divf %28, %29 : vector<1x256xf32>
    %31 = arith.mulf %24, %24 : vector<16x256xf32>
    %cst_14 = arith.constant dense<0.000000e+00> : vector<256xf32>
    %32 = vector.multi_reduction <add>, %31, %cst_14 [0] : vector<16x256xf32> to vector<256xf32>
    %33 = vector.shape_cast %32 : vector<256xf32> to vector<1x256xf32>
    %cst_15 = arith.constant 1.600000e+01 : f32
    %34 = vector.broadcast %cst_15 : f32 to vector<1x256xf32>
    %35 = arith.divf %33, %34 : vector<1x256xf32>
    %36 = arith.mulf %30, %30 : vector<1x256xf32>
    %37 = arith.subf %35, %36 : vector<1x256xf32>
    %38 = vector.broadcast %30 : vector<1x256xf32> to vector<16x256xf32>
    %39 = arith.subf %24, %38 : vector<16x256xf32>
    %cst_16 = arith.constant 9.99999974E-6 : f32
    %40 = vector.broadcast %cst_16 : f32 to vector<1x256xf32>
    %41 = arith.addf %37, %40 : vector<1x256xf32>
    %42 = math.rsqrt %41 : vector<1x256xf32>
    %43 = vector.broadcast %42 : vector<1x256xf32> to vector<16x256xf32>
    %44 = arith.mulf %39, %43 : vector<16x256xf32>
    %45 = vector.broadcast %25 : vector<1x256xf32> to vector<16x256xf32>
    %46 = arith.mulf %44, %45 : vector<16x256xf32>
    %47 = vector.broadcast %26 : vector<1x256xf32> to vector<16x256xf32>
    %48 = arith.addf %46, %47 : vector<16x256xf32>
    %cst_17 = arith.constant 0.000000e+00 : f32
    %49 = vector.broadcast %cst_17 : f32 to vector<16x256xf32>
    %50 = arith.maximumf %48, %49 : vector<16x256xf32>
    %51 = arith.truncf %50 : vector<16x256xf32> to vector<16x256xbf16>
    %c0_18 = arith.constant 0 : index
    %c0_19 = arith.constant 0 : index
    %52 = vector.load %arg6[%c0_18, %c0_19] : memref<256x256xbf16, #tpu.memory_space<vmem>>, vector<256x256xbf16>
    %cst_20 = arith.constant dense<0.000000e+00> : vector<16x256xf32>
    %53 = tpu.matmul %51, %52, %cst_20 {dimension_numbers = #tpu.dot_dimension_numbers<[1], [0], [0], [1], [0, 0, 1, 1], [], []>} : vector<16x256xbf16>, vector<256x256xbf16>, vector<16x256xf32> -> vector<16x256xf32>
    %c0_21 = arith.constant 0 : index
    %c0_22 = arith.constant 0 : index
    %54 = vector.load %arg7[%c0_21, %c0_22] : memref<1x256xf32, #tpu.memory_space<vmem>>, vector<1x256xf32>
    %c0_23 = arith.constant 0 : index
    %c0_24 = arith.constant 0 : index
    %55 = vector.load %arg8[%c0_23, %c0_24] : memref<1x256xf32, #tpu.memory_space<vmem>>, vector<1x256xf32>
    %cst_25 = arith.constant dense<0.000000e+00> : vector<256xf32>
    %56 = vector.multi_reduction <add>, %53, %cst_25 [0] : vector<16x256xf32> to vector<256xf32>
    %57 = vector.shape_cast %56 : vector<256xf32> to vector<1x256xf32>
    %cst_26 = arith.constant 1.600000e+01 : f32
    %58 = vector.broadcast %cst_26 : f32 to vector<1x256xf32>
    %59 = arith.divf %57, %58 : vector<1x256xf32>
    %60 = arith.mulf %53, %53 : vector<16x256xf32>
    %cst_27 = arith.constant dense<0.000000e+00> : vector<256xf32>
    %61 = vector.multi_reduction <add>, %60, %cst_27 [0] : vector<16x256xf32> to vector<256xf32>
    %62 = vector.shape_cast %61 : vector<256xf32> to vector<1x256xf32>
    %cst_28 = arith.constant 1.600000e+01 : f32
    %63 = vector.broadcast %cst_28 : f32 to vector<1x256xf32>
    %64 = arith.divf %62, %63 : vector<1x256xf32>
    %65 = arith.mulf %59, %59 : vector<1x256xf32>
    %66 = arith.subf %64, %65 : vector<1x256xf32>
    %67 = vector.broadcast %59 : vector<1x256xf32> to vector<16x256xf32>
    %68 = arith.subf %53, %67 : vector<16x256xf32>
    %cst_29 = arith.constant 9.99999974E-6 : f32
    %69 = vector.broadcast %cst_29 : f32 to vector<1x256xf32>
    %70 = arith.addf %66, %69 : vector<1x256xf32>
    %71 = math.rsqrt %70 : vector<1x256xf32>
    %72 = vector.broadcast %71 : vector<1x256xf32> to vector<16x256xf32>
    %73 = arith.mulf %68, %72 : vector<16x256xf32>
    %74 = vector.broadcast %54 : vector<1x256xf32> to vector<16x256xf32>
    %75 = arith.mulf %73, %74 : vector<16x256xf32>
    %76 = vector.broadcast %55 : vector<1x256xf32> to vector<16x256xf32>
    %77 = arith.addf %75, %76 : vector<16x256xf32>
    %cst_30 = arith.constant 0.000000e+00 : f32
    %78 = vector.broadcast %cst_30 : f32 to vector<16x256xf32>
    %79 = arith.maximumf %77, %78 : vector<16x256xf32>
    %80 = arith.truncf %79 : vector<16x256xf32> to vector<16x256xbf16>
    %c0_31 = arith.constant 0 : index
    %c0_32 = arith.constant 0 : index
    %81 = vector.load %arg9[%c0_31, %c0_32] : memref<256x128xbf16, #tpu.memory_space<vmem>>, vector<256x128xbf16>
    %cst_33 = arith.constant dense<0.000000e+00> : vector<16x128xf32>
    %82 = tpu.matmul %80, %81, %cst_33 {dimension_numbers = #tpu.dot_dimension_numbers<[1], [0], [0], [1], [0, 0, 1, 1], [], []>} : vector<16x256xbf16>, vector<256x128xbf16>, vector<16x128xf32> -> vector<16x128xf32>
    %cst_34 = arith.constant dense<0.000000e+00> : vector<128xf32>
    %83 = vector.multi_reduction <add>, %82, %cst_34 [0] : vector<16x128xf32> to vector<128xf32>
    %84 = vector.shape_cast %83 : vector<128xf32> to vector<1x128xf32>
    %cst_35 = arith.constant 1.600000e+01 : f32
    %85 = vector.broadcast %cst_35 : f32 to vector<1x128xf32>
    %86 = arith.divf %84, %85 : vector<1x128xf32>
    %87 = arith.mulf %82, %82 : vector<16x128xf32>
    %cst_36 = arith.constant dense<0.000000e+00> : vector<128xf32>
    %88 = vector.multi_reduction <add>, %87, %cst_36 [0] : vector<16x128xf32> to vector<128xf32>
    %89 = vector.shape_cast %88 : vector<128xf32> to vector<1x128xf32>
    %cst_37 = arith.constant 1.600000e+01 : f32
    %90 = vector.broadcast %cst_37 : f32 to vector<1x128xf32>
    %91 = arith.divf %89, %90 : vector<1x128xf32>
    %92 = arith.mulf %86, %86 : vector<1x128xf32>
    %93 = arith.subf %91, %92 : vector<1x128xf32>
    %94 = vector.broadcast %86 : vector<1x128xf32> to vector<16x128xf32>
    %95 = arith.subf %82, %94 : vector<16x128xf32>
    %cst_38 = arith.constant 9.99999974E-6 : f32
    %96 = vector.broadcast %cst_38 : f32 to vector<1x128xf32>
    %97 = arith.addf %93, %96 : vector<1x128xf32>
    %98 = math.rsqrt %97 : vector<1x128xf32>
    %99 = vector.broadcast %98 : vector<1x128xf32> to vector<16x128xf32>
    %100 = arith.mulf %95, %99 : vector<16x128xf32>
    %c0_39 = arith.constant 0 : index
    %c0_40 = arith.constant 0 : index
    %101 = vector.load %arg15[%c0_39, %c0_40] : memref<16x128xf32, #tpu.memory_space<vmem>>, vector<16x128xf32>
    tpu.vector_store %arg15[%c0_39, %c0_40], %100 {strides = array<i32>} : memref<16x128xf32, #tpu.memory_space<vmem>>, vector<16x128xf32>,
    %102 = arith.truncf %100 : vector<16x128xf32> to vector<16x128xbf16>
    %c0_41 = arith.constant 0 : index
    %c0_42 = arith.constant 0 : index
    %103 = vector.load %arg10[%c0_41, %c0_42] : memref<128x128xbf16, #tpu.memory_space<vmem>>, vector<128x128xbf16>
    %cst_43 = arith.constant dense<0.000000e+00> : vector<16x128xf32>
    %104 = tpu.matmul %102, %103, %cst_43 {dimension_numbers = #tpu.dot_dimension_numbers<[1], [0], [0], [1], [0, 0, 1, 1], [], []>} : vector<16x128xbf16>, vector<128x128xbf16>, vector<16x128xf32> -> vector<16x128xf32>
    %c0_44 = arith.constant 0 : index
    %c0_45 = arith.constant 0 : index
    %105 = vector.load %arg11[%c0_44, %c0_45] : memref<1x128xf32, #tpu.memory_space<vmem>>, vector<1x128xf32>
    %c0_46 = arith.constant 0 : index
    %c0_47 = arith.constant 0 : index
    %106 = vector.load %arg12[%c0_46, %c0_47] : memref<1x128xf32, #tpu.memory_space<vmem>>, vector<1x128xf32>
    %cst_48 = arith.constant dense<0.000000e+00> : vector<128xf32>
    %107 = vector.multi_reduction <add>, %104, %cst_48 [0] : vector<16x128xf32> to vector<128xf32>
    %108 = vector.shape_cast %107 : vector<128xf32> to vector<1x128xf32>
    %cst_49 = arith.constant 1.600000e+01 : f32
    %109 = vector.broadcast %cst_49 : f32 to vector<1x128xf32>
    %110 = arith.divf %108, %109 : vector<1x128xf32>
    %111 = arith.mulf %104, %104 : vector<16x128xf32>
    %cst_50 = arith.constant dense<0.000000e+00> : vector<128xf32>
    %112 = vector.multi_reduction <add>, %111, %cst_50 [0] : vector<16x128xf32> to vector<128xf32>
    %113 = vector.shape_cast %112 : vector<128xf32> to vector<1x128xf32>
    %cst_51 = arith.constant 1.600000e+01 : f32
    %114 = vector.broadcast %cst_51 : f32 to vector<1x128xf32>
    %115 = arith.divf %113, %114 : vector<1x128xf32>
    %116 = arith.mulf %110, %110 : vector<1x128xf32>
    %117 = arith.subf %115, %116 : vector<1x128xf32>
    %118 = vector.broadcast %110 : vector<1x128xf32> to vector<16x128xf32>
    %119 = arith.subf %104, %118 : vector<16x128xf32>
    %cst_52 = arith.constant 9.99999974E-6 : f32
    %120 = vector.broadcast %cst_52 : f32 to vector<1x128xf32>
    %121 = arith.addf %117, %120 : vector<1x128xf32>
    %122 = math.rsqrt %121 : vector<1x128xf32>
    %123 = vector.broadcast %122 : vector<1x128xf32> to vector<16x128xf32>
    %124 = arith.mulf %119, %123 : vector<16x128xf32>
    %125 = vector.broadcast %105 : vector<1x128xf32> to vector<16x128xf32>
    %126 = arith.mulf %124, %125 : vector<16x128xf32>
    %127 = vector.broadcast %106 : vector<1x128xf32> to vector<16x128xf32>
    %128 = arith.addf %126, %127 : vector<16x128xf32>
    %cst_53 = arith.constant 0.000000e+00 : f32
    %129 = vector.broadcast %cst_53 : f32 to vector<16x128xf32>
    %130 = arith.maximumf %128, %129 : vector<16x128xf32>
    %131 = arith.truncf %130 : vector<16x128xf32> to vector<16x128xbf16>
    %c0_54 = arith.constant 0 : index
    %c0_55 = arith.constant 0 : index
    %132 = vector.load %arg13[%c0_54, %c0_55] : memref<128x128xbf16, #tpu.memory_space<vmem>>, vector<128x128xbf16>
    %cst_56 = arith.constant dense<0.000000e+00> : vector<16x128xf32>
    %133 = tpu.matmul %131, %132, %cst_56 {dimension_numbers = #tpu.dot_dimension_numbers<[1], [0], [0], [1], [0, 0, 1, 1], [], []>} : vector<16x128xbf16>, vector<128x128xbf16>, vector<16x128xf32> -> vector<16x128xf32>
    %c0_57 = arith.constant 0 : index
    %c0_58 = arith.constant 0 : index
    %134 = vector.load %arg14[%c0_57, %c0_58] : memref<1x128xf32, #tpu.memory_space<vmem>>, vector<1x128xf32>
    %135 = vector.broadcast %134 : vector<1x128xf32> to vector<16x128xf32>
    %136 = arith.addf %133, %135 : vector<16x128xf32>
    %c0_59 = arith.constant 0 : index
    %c0_60 = arith.constant 0 : index
    %137 = vector.load %arg16[%c0_59, %c0_60] : memref<16x128xf32, #tpu.memory_space<vmem>>, vector<16x128xf32>
    tpu.vector_store %arg16[%c0_59, %c0_60], %136 {strides = array<i32>} : memref<16x128xf32, #tpu.memory_space<vmem>>, vector<16x128xf32>,
    return
  }
  func.func @transform_0(%arg0: i32) -> (i32, i32) {
    %c0_i32 = arith.constant 0 : i32
    %c0_i32_0 = arith.constant 0 : i32
    return %arg0, %c0_i32 : i32, i32
  }
  func.func @transform_1(%arg0: i32) -> (i32, i32) {
    %c0_i32 = arith.constant 0 : i32
    %c0_i32_0 = arith.constant 0 : i32
    %c0_i32_1 = arith.constant 0 : i32
    return %c0_i32, %c0_i32_0 : i32, i32
  }
  func.func @transform_2(%arg0: i32) -> (i32, i32) {
    %c0_i32 = arith.constant 0 : i32
    %c0_i32_0 = arith.constant 0 : i32
    %c0_i32_1 = arith.constant 0 : i32
    return %c0_i32, %c0_i32_0 : i32, i32
  }
  func.func @transform_3(%arg0: i32) -> (i32, i32) {
    %c0_i32 = arith.constant 0 : i32
    %c0_i32_0 = arith.constant 0 : i32
    %c0_i32_1 = arith.constant 0 : i32
    return %c0_i32, %c0_i32_0 : i32, i32
  }
  func.func @transform_4(%arg0: i32) -> (i32, i32) {
    %c0_i32 = arith.constant 0 : i32
    %c0_i32_0 = arith.constant 0 : i32
    %c0_i32_1 = arith.constant 0 : i32
    return %c0_i32, %c0_i32_0 : i32, i32
  }
  func.func @transform_5(%arg0: i32) -> (i32, i32) {
    %c0_i32 = arith.constant 0 : i32
    %c0_i32_0 = arith.constant 0 : i32
    %c0_i32_1 = arith.constant 0 : i32
    return %c0_i32, %c0_i32_0 : i32, i32
  }
  func.func @transform_6(%arg0: i32) -> (i32, i32) {
    %c0_i32 = arith.constant 0 : i32
    %c0_i32_0 = arith.constant 0 : i32
    %c0_i32_1 = arith.constant 0 : i32
    return %c0_i32, %c0_i32_0 : i32, i32
  }
  func.func @transform_7(%arg0: i32) -> (i32, i32) {
    %c0_i32 = arith.constant 0 : i32
    %c0_i32_0 = arith.constant 0 : i32
    %c0_i32_1 = arith.constant 0 : i32
    return %c0_i32, %c0_i32_0 : i32, i32
  }
  func.func @transform_8(%arg0: i32) -> (i32, i32) {
    %c0_i32 = arith.constant 0 : i32
    %c0_i32_0 = arith.constant 0 : i32
    %c0_i32_1 = arith.constant 0 : i32
    return %c0_i32, %c0_i32_0 : i32, i32
  }
  func.func @transform_9(%arg0: i32) -> (i32, i32) {
    %c0_i32 = arith.constant 0 : i32
    %c0_i32_0 = arith.constant 0 : i32
    %c0_i32_1 = arith.constant 0 : i32
    return %c0_i32, %c0_i32_0 : i32, i32
  }
  func.func @transform_10(%arg0: i32) -> (i32, i32) {
    %c0_i32 = arith.constant 0 : i32
    %c0_i32_0 = arith.constant 0 : i32
    %c0_i32_1 = arith.constant 0 : i32
    return %c0_i32, %c0_i32_0 : i32, i32
  }
  func.func @transform_11(%arg0: i32) -> (i32, i32) {
    %c0_i32 = arith.constant 0 : i32
    %c0_i32_0 = arith.constant 0 : i32
    %c0_i32_1 = arith.constant 0 : i32
    return %c0_i32, %c0_i32_0 : i32, i32
  }
  func.func @transform_12(%arg0: i32) -> (i32, i32) {
    %c0_i32 = arith.constant 0 : i32
    %c0_i32_0 = arith.constant 0 : i32
    %c0_i32_1 = arith.constant 0 : i32
    return %c0_i32, %c0_i32_0 : i32, i32
  }
  func.func @transform_13(%arg0: i32) -> (i32, i32) {
    %c0_i32 = arith.constant 0 : i32
    %c0_i32_0 = arith.constant 0 : i32
    %c0_i32_1 = arith.constant 0 : i32
    return %c0_i32, %c0_i32_0 : i32, i32
  }
  func.func @transform_14(%arg0: i32) -> (i32, i32) {
    %c0_i32 = arith.constant 0 : i32
    %c0_i32_0 = arith.constant 0 : i32
    return %arg0, %c0_i32 : i32, i32
  }
  func.func @transform_15(%arg0: i32) -> (i32, i32) {
    %c0_i32 = arith.constant 0 : i32
    %c0_i32_0 = arith.constant 0 : i32
    return %arg0, %c0_i32 : i32, i32
  }
}

</mosaic_0001>

<bundles_post_ra>
// kernel: tpu_custom_call.1
= control target key start
LH: loop header
LB: loop body
LE: loop exit
PB: predicated region body
PF: predicated region fallthrough
CT: control target
= control target key end

     0   :  { %s3669_s0 = inlined_call_operand.hbm [shape: bf16[256,128], index: 0, kind: input, shape index: {}]   ;;  %s3670_s1 = inlined_call_operand.hbm [shape: bf16[128,256], index: 1, kind: input, shape index: {}]   ;;  %s3671_s2 = inlined_call_operand.hbm [shape: bf16[256,256], index: 2, kind: input, shape index: {}]   ;;  %s3672_s3 = inlined_call_operand.vmem [shape: f32[1,256], index: 3, kind: input, shape index: {}]   ;;  %s3673_s4 = inlined_call_operand.vmem [shape: f32[1,256], index: 4, kind: input, shape index: {}]   ;;  %s3674_s5 = inlined_call_operand.hbm [shape: bf16[256,256], index: 5, kind: input, shape index: {}]   ;;  %s3675_s6 = inlined_call_operand.vmem [shape: f32[1,256], index: 6, kind: input, shape index: {}]   ;;  %s3676_s7 = inlined_call_operand.vmem [shape: f32[1,256], index: 7, kind: input, shape index: {}]   ;;  %s3677_s8 = inlined_call_operand.hbm [shape: bf16[256,128], index: 8, kind: input, shape index: {}]   ;;  %s3678_s9 = inlined_call_operand.hbm [shape: bf16[128,128], index: 9, kind: input, shape index: {}]   ;;  %s3679_s10 = inlined_call_operand.vmem [shape: f32[1,128], index: 10, kind: input, shape index: {}]   ;;  %s3680_s11 = inlined_call_operand.vmem [shape: f32[1,128], index: 11, kind: input, shape index: {}]   ;;  %s3681_s12 = inlined_call_operand.hbm [shape: bf16[128,128], index: 12, kind: input, shape index: {}]   ;;  %s3682_s13 = inlined_call_operand.vmem [shape: f32[1,128], index: 13, kind: input, shape index: {}]   ;;  %s3683_s14 = inlined_call_operand.hbm [shape: f32[32,128], index: 14, kind: output, shape index: {0}]   ;;  %s3684_s15 = inlined_call_operand.hbm [shape: f32[32,128], index: 15, kind: output, shape index: {1}]  }
   0x1   :  { %3693 = sst [smem:[#allocation23_spill]] %s3670_s1 }
   0x2   :  { %3694 = sst [smem:[#allocation24_spill]] %s3674_s5 }
   0x3   :  { %3695 = sst [smem:[#allocation25_spill]] %s3675_s6 }
   0x4   :  { %3696 = sst [smem:[#allocation26_spill]] %s3676_s7 }
   0x5   :  { %3697 = sst [smem:[#allocation27_spill]] %s3679_s10 }
   0x6   :  { %3698 = sst [smem:[#allocation28_spill]] %s3680_s11 }
   0x7   :  { %3699 = sst [smem:[#allocation29_spill]] %s3682_s13 }
   0x8   :  { %3700 = sst [smem:[#allocation30_spill]] %s3683_s14 }
   0x9   :  { %3701 = sst [smem:[#allocation31_spill]] %s3684_s15 }
   0xa   :  { %21 = vsyncpa [#allocation3], 0 }
   0xb   :  { %23 = vsyncpa [#allocation3 + $0x1], 0 }
   0xc   :  { %24 = vsyncpa [#allocation6], 0 }
   0xd   :  { %25 = vsyncpa [#allocation9], 0 }
   0xe   :  { %26 = vsyncpa [#allocation12], 0 }
   0xf   :  { %27 = vsyncpa [#allocation4], 0 }
  0x10   :  { %29 = vsyncpa [#allocation4 + $0x1], 0 }
  0x11   :  { %30 = vsyncpa [#allocation16], 0 }
  0x12   :  { %32 = vsyncpa [#allocation16 + $0x1], 0  ;;  %s3203_s18 = smov 0   ;;  %s3205_s19 = smov 0  }
  0x13   :  { %s3207_s20 = smov 0   ;;  %s3209_s21 = smov 0  }
  0x14 LB: > { %s3105_s22 = smov [#allocation5]   ;;  %s3224_s24 = sadd.s32 4294967295, %s3103_s21   ;;  %s3103_s21 = sphi %s3209_s21, %s3736_s21   ;;  %s3099_s20 = sphi %s3207_s20, %s3735_s20   ;;  %s3095_s19 = sphi %s3205_s19, %s3734_s19   ;;  %s3091_s18 = sphi %s3203_s18, %s3733_s18  }
  0x15   : > { %s406_s23 = sshll.u32 %s3105_s22, 4  ;;  %p2267_p0 = scmp.ge.s32.totalorder %s3103_s21, 1  ;;  %s3229_s23 = int_to_ptr.vmem [resolvable:$true] %s406_s23 }
  0x16   : > { %p3687_p1 = scmp.eq.s32.totalorder %s3224_s24, 0  ;;  %p394_p2 = scmp.lt.s32.totalorder %s3103_s21, 3 }
  0x17   : > { %s3106_s26 = smov [#allocation8]   ;;  %s3107_s29 = smov [#allocation11]  }
  0x18   : > { %p3231_p3 = pnand %p2267_p0, %p394_p2  ;;  %s438_s27 = sshll.u32 %s3106_s26, 4  ;;  %s3244_s27 = int_to_ptr.vmem [resolvable:$true] %s438_s27 }
  0x19   : > { %s3246_s30 = sshll.u32 %s3107_s29, 4  ;;  %s3704_s1 = sld [smem:[#allocation23_spill]]  ;;  %s471_s30 = int_to_ptr.vmem [resolvable:$true] %s3246_s30 }
  0x1a   : > { %s3702_s25 = scalar_select %p3231_p3, 1, 0 }
  0x1b   : > { %p2532_p5 = pneg %p3231_p3 }
  0x1d   : > { %p3240_p6 = pnand %p2532_p5, %p3687_p1 }
  0x1f   : > { %s2795_s22 = scalar_lea.hbm %s3704_s1, 2048  ;;  %p3256_p8 = pneg %p3240_p6 }
  0x20   : > { %p2796_p7 = scmp.ne.s32.totalorder %s3704_s1, %s2795_s22  ;;  %p2802_p11 = scmp.lt.u32.totalorder %s2795_s22, %s3704_s1 }
  0x22   : > { %p2798_p9 = pnand %p3256_p8, %p2796_p7 }
  0x24   : > { %p2799_p10 = pneg %p2798_p9 }
  0x26   : > { %p2804_p12 = pnand %p2802_p11, %p2799_p10 }
  0x28   : > { %2807 = shalt.err (!%p2804_p12)
}
  0x29   : > { %s2808_s13 = scalar_lea.vmem %s3229_s23, 2048  ;;  %p2816_p5 = scmp.lt.s32.totalorder %s3229_s23, %s3229_s23 }
  0x2a   : > { %p2809_p13 = scmp.ne.s32.totalorder %s3229_s23, %s2808_s13  ;;  %p2817_p4 = scmp.lt.s32.totalorder %s2808_s13, %s2808_s13 }
  0x2c   : > { %p2811_p0 = pnand %p2809_p13, %p3256_p8  ;;  %p2818_p7 = por %p2817_p4, %p2816_p5 }
  0x2e   : > { %p2812_p2 = pneg %p2811_p0 }
  0x30   : > { %p2819_p9 = pnand %p2818_p7, %p2812_p2 }
  0x32   : > { %2822 = shalt.err (!%p2819_p9)
}
  0x33   : > { %s3689_s15 = smov 128   ;;  %s3690_s14 = smov 8  }
  0x34   : > { %2535 = dma.hbm_to_vmem [thread:$0]  (!%p3240_p6), %s3704_s1, 2048, %s3229_s23, [#allocation6], %s3689_s15, %s3689_s15, %s3690_s14  }
  0x35   : > { %s3706_s5 = sld [smem:[#allocation24_spill]] }
  0x3b   : > { %s2823_s13 = scalar_lea.hbm %s3706_s5, 4096 }
  0x3c   : > { %p2824_p4 = scmp.ne.s32.totalorder %s3706_s5, %s2823_s13  ;;  %p2830_p12 = scmp.lt.u32.totalorder %s2823_s13, %s3706_s5 }
  0x3e   : > { %p2826_p10 = pnand %p2824_p4, %p3256_p8 }
  0x40   : > { %p2827_p11 = pneg %p2826_p10 }
  0x42   : > { %p2832_p13 = pnand %p2830_p12, %p2827_p11 }
  0x44   : > { %2835 = shalt.err (!%p2832_p13)
}
  0x45   : > { %s2836_s23 = scalar_lea.vmem %s3244_s27, 4096  ;;  %p2844_p7 = scmp.lt.s32.totalorder %s3244_s27, %s3244_s27 }
  0x46   : > { %p2837_p0 = scmp.ne.s32.totalorder %s3244_s27, %s2836_s23  ;;  %p2845_p9 = scmp.lt.s32.totalorder %s2836_s23, %s2836_s23 }
  0x48   : > { %p2839_p2 = pnand %p2837_p0, %p3256_p8  ;;  %p2846_p4 = por %p2845_p9, %p2844_p7 }
  0x4a   : > { %p2840_p5 = pneg %p2839_p2 }
  0x4c   : > { %p2847_p10 = pnand %p2846_p4, %p2840_p5 }
  0x4e   : > { %2850 = shalt.err (!%p2847_p10)
}
  0x4f   : > { %2541 = dma.hbm_to_vmem [thread:$0]  (!%p3240_p6), %s3706_s5, 4096, %s3244_s27, [#allocation9], %s3689_s15, %s3689_s15, %s3690_s14  }
  0x50   : > { %s2851_s16 = scalar_lea.hbm %s3678_s9, 1024 }
  0x51   : > { %p2852_p11 = scmp.ne.s32.totalorder %s3678_s9, %s2851_s16  ;;  %p2858_p0 = scmp.lt.u32.totalorder %s2851_s16, %s3678_s9 }
  0x53   : > { %p2854_p12 = pnand %p2852_p11, %p3256_p8 }
  0x55   : > { %p2855_p13 = pneg %p2854_p12 }
  0x57   : > { %p2860_p2 = pnand %p2858_p0, %p2855_p13 }
  0x59   : > { %2863 = shalt.err (!%p2860_p2)
}
  0x5a   : > { %s2864_s23 = scalar_lea.vmem %s471_s30, 1024  ;;  %p2872_p4 = scmp.lt.s32.totalorder %s471_s30, %s471_s30 }
  0x5b   : > { %p2865_p5 = scmp.ne.s32.totalorder %s471_s30, %s2864_s23  ;;  %p2873_p10 = scmp.lt.s32.totalorder %s2864_s23, %s2864_s23 }
  0x5d   : > { %p2867_p7 = pnand %p2865_p5, %p3256_p8  ;;  %p2874_p1 = por %p2873_p10, %p2872_p4 }
  0x5f   : > { %p2868_p9 = pneg %p2867_p7 }
  0x61   : > { %p2875_p3 = pnand %p2874_p1, %p2868_p9 }
  0x63   : > { %2878 = shalt.err (!%p2875_p3)
}
  0x64   : > { %s3110_s27 = smov 64   ;;  %s3111_s6 = smov 4  }
  0x65   : > { %2547 = dma.hbm_to_vmem [thread:$0]  (!%p3240_p6), %s3678_s9, 1024, %s471_s30, [#allocation12], %s3110_s27, %s3110_s27, %s3111_s6  }
  0x66   : > { %s3112_s11 = smov [#allocation7]   ;;  %s3113_s17 = smov [#allocation10]  }
  0x67   : > { %s419_s16 = sshll.u32 %s3112_s11, 4  ;;  %s457_s22 = sshll.u32 %s3113_s17, 4  ;;  %s420_s16 = int_to_ptr.vmem [resolvable:$true] %s419_s16  ;;  %s458_s22 = int_to_ptr.vmem [resolvable:$true] %s457_s22 }
  0x68   : > { %s2879_s23 = scalar_lea.hbm %s3671_s2, 4096 }
  0x69   : > { %p2880_p1 = scmp.ne.s32.totalorder %s3671_s2, %s2879_s23  ;;  %p2886_p12 = scmp.lt.u32.totalorder %s2879_s23, %s3671_s2 }
  0x6b   : > { %p2882_p3 = pnand %p2880_p1, %p3256_p8 }
  0x6d   : > { %p2883_p11 = pneg %p2882_p3 }
  0x6f   : > { %p2888_p13 = pnand %p2886_p12, %p2883_p11 }
  0x71   : > { %2891 = shalt.err (!%p2888_p13)
}
  0x72   : > { %s2892_s30 = scalar_lea.vmem %s420_s16, 4096  ;;  %p2900_p7 = scmp.lt.s32.totalorder %s420_s16, %s420_s16 }
  0x73   : > { %p2893_p0 = scmp.ne.s32.totalorder %s420_s16, %s2892_s30  ;;  %p2901_p9 = scmp.lt.s32.totalorder %s2892_s30, %s2892_s30 }
  0x75   : > { %p2895_p2 = pnand %p2893_p0, %p3256_p8  ;;  %p2902_p4 = por %p2901_p9, %p2900_p7 }
  0x77   : > { %p2896_p5 = pneg %p2895_p2 }
  0x79   : > { %p2903_p10 = pnand %p2902_p4, %p2896_p5 }
  0x7b   : > { %2906 = shalt.err (!%p2903_p10)
}
  0x7c   : > { %s3707_s15 = smov 8   ;;  %s3708_s14 = smov 128  }
  0x7d   : > { %2538 = dma.hbm_to_vmem [thread:$0]  (!%p3240_p6), %s3671_s2, 4096, %s420_s16, [#allocation6], %s3708_s14, %s3708_s14, %s3707_s15  }
  0x7e   : > { %s2907_s11 = scalar_lea.hbm %s3677_s8, 2048 }
  0x7f   : > { %p2908_p1 = scmp.ne.s32.totalorder %s3677_s8, %s2907_s11  ;;  %p2914_p12 = scmp.lt.u32.totalorder %s2907_s11, %s3677_s8 }
  0x81   : > { %p2910_p3 = pnand %p2908_p1, %p3256_p8 }
  0x83   : > { %p2911_p11 = pneg %p2910_p3 }
  0x85   : > { %p2916_p13 = pnand %p2914_p12, %p2911_p11 }
  0x87   : > { %2919 = shalt.err (!%p2916_p13)
}
  0x88   : > { %s2920_s30 = scalar_lea.vmem %s458_s22, 2048  ;;  %p2928_p7 = scmp.lt.s32.totalorder %s458_s22, %s458_s22 }
  0x89   : > { %p2921_p0 = scmp.ne.s32.totalorder %s458_s22, %s2920_s30  ;;  %p2929_p9 = scmp.lt.s32.totalorder %s2920_s30, %s2920_s30 }
  0x8b   : > { %p2923_p2 = pnand %p2921_p0, %p3256_p8  ;;  %p2930_p4 = por %p2929_p9, %p2928_p7 }
  0x8d   : > { %p2924_p5 = pneg %p2923_p2 }
  0x8f   : > { %p2931_p10 = pnand %p2930_p4, %p2924_p5 }
  0x91   : > { %2934 = shalt.err (!%p2931_p10)
}
  0x92   : > { %2544 = dma.hbm_to_vmem [thread:$0]  (!%p3240_p6), %s3677_s8, 2048, %s458_s22, [#allocation9], %s3110_s27, %s3110_s27, %s3111_s6  }
  0x93   : > { %s3114_s14 = smov [#allocation13]   ;;  %s2935_s10 = scalar_lea.hbm %s3681_s12, 1024 }
  0x94   : > { %s489_s1 = sshll.u32 %s3114_s14, 4  ;;  %p2936_p1 = scmp.ne.s32.totalorder %s3681_s12, %s2935_s10  ;;  %s490_s1 = int_to_ptr.vmem [resolvable:$true] %s489_s1 }
  0x95   : > { %p2942_p12 = scmp.lt.u32.totalorder %s2935_s10, %s3681_s12 }
  0x96   : > { %p2938_p3 = pnand %p2936_p1, %p3256_p8 }
  0x98   : > { %p2939_p11 = pneg %p2938_p3 }
  0x9a   : > { %p2944_p13 = pnand %p2942_p12, %p2939_p11 }
  0x9c   : > { %2947 = shalt.err (!%p2944_p13)
}
  0x9d   : > { %s2948_s22 = scalar_lea.vmem %s490_s1, 1024  ;;  %p2956_p7 = scmp.lt.s32.totalorder %s490_s1, %s490_s1 }
  0x9e   : > { %p2949_p0 = scmp.ne.s32.totalorder %s490_s1, %s2948_s22  ;;  %p2957_p9 = scmp.lt.s32.totalorder %s2948_s22, %s2948_s22 }
  0xa0   : > { %p2951_p2 = pnand %p2949_p0, %p3256_p8  ;;  %p2958_p4 = por %p2957_p9, %p2956_p7 }
  0xa2   : > { %p2952_p5 = pneg %p2951_p2 }
  0xa4   : > { %p2959_p10 = pnand %p2958_p4, %p2952_p5 }
  0xa6   : > { %2962 = shalt.err (!%p2959_p10)
}
  0xa7   : > { %2550 = dma.hbm_to_vmem [thread:$0]  (!%p3240_p6), %s3681_s12, 1024, %s490_s1, [#allocation12], %s3110_s27, %s3110_s27, %s3111_s6  }
  0xa8   : > { %s2266_s28 = sadd.s32 4294967294, %s3103_s21   ;;  %s3393_s26 = sadd.s32 1, %s3103_s21  }
  0xa9   : > { %s42_s16 = ssub.s32 %s3103_s21, %s3393_s26  ;;  %s45_s15 = sadd.s32 1, %s3099_s20 }
  0xaa   : > { %p43_p8 = scmp.eq.s32.totalorder %s42_s16, 0  ;;  %p52_p1 = scmp.ne.s32.totalorder %s3099_s20, %s3095_s19 }
  0xab   : > { %p53_p3 = scmp.eq.s32.totalorder %s3103_s21, 0  ;;  %p58_p11 = scmp.ne.s32.totalorder %s3095_s19, %s3091_s18 }
  0xac   : > { %s3404_s14 = scalar_select %p43_p8, %s3099_s20, %s45_s15  }
  0xad   : > { %p3406_p12 = por %p53_p3, %p52_p1  ;;  %p3710_p13 = scmp.eq.s32.totalorder %s3224_s24, 0 }
  0xae   : > { %p355_p0 = scmp.eq.s32.totalorder %s3224_s24, 1  ;;  %p361_p2 = scmp.eq.s32.totalorder %s2266_s28, 1 }
  0xaf   : > { %p3412_p6 = por %p3710_p13, %p58_p11  ;;  %p2568_p5 = scmp.lt.s32.totalorder %s3103_s21, 2 }
  0xb0   : > { %s506_s7 = sand.u32 1, %s3099_s20   ;;  %p3419_p7 = por %p355_p0, %p52_p1 }
  0xb1   : > { %p3423_p9 = por %p361_p2, %p58_p11  ;;  %s2275_s17 = sshll.u32 %s506_s7, 6 }
  0xb2   : > { %s3712_s10 = scalar_select %p3419_p7, 1, 0 }
  0xb3   : > { %s3713_s11 = scalar_select %p3423_p9, 1, 0 }
  0xb4   : > { %s2419_s29 = sshll.u32 %s3103_s21, 10  ;;  %s510_s30 = scalar_lea.vmem [#allocation2], %s2275_s17 }
  0xb5   : > { %s3431_s23 = scalar_lea.hbm %s3669_s0, %s2419_s29  ;;  %s517_s28 = sshll.u32 %s510_s30, 4  ;;  %s3433_s28 = int_to_ptr.vmem [resolvable:$true] %s517_s28 }
  0xb6   : > { %p3437_p4 = pnand %p2568_p5, %p3406_p12  ;;  %s3441_s15 = scalar_lea.sflag [#allocation3], %s506_s7 }
  0xb7   : > { %s2963_s13 = scalar_lea.hbm %s3431_s23, 1024  ;;  %s2968_s5 = scalar_lea.hbm %s3669_s0, 2048 }
  0xb8   : > { %p2964_p10 = scmp.ne.s32.totalorder %s3431_s23, %s2963_s13  ;;  %p2965_p8 = pneg %p3437_p4 }
  0xb9   : > { %p2969_p11 = scmp.lt.u32.totalorder %s3431_s23, %s3669_s0  ;;  %p2970_p12 = scmp.lt.u32.totalorder %s2968_s5, %s2963_s13 }
  0xba   : > { %p2966_p1 = pnand %p2965_p8, %p2964_p10  ;;  %p2972_p0 = scmp.lt.u32.totalorder %s2963_s13, %s3431_s23 }
  0xbb   : > { %p2971_p13 = por %p2970_p12, %p2969_p11 }
  0xbc   : > { %p2967_p3 = pneg %p2966_p1 }
  0xbd   : > { %p2973_p2 = por %p2972_p0, %p2971_p13 }
  0xbf   : > { %p2974_p5 = pnand %p2973_p2, %p2967_p3 }
  0xc1   : > { %2977 = shalt.err (!%p2974_p5)
}
  0xc2   : > { %s2978_s7 = scalar_lea.vmem %s3433_s28, 1024  ;;  %s3115_s17 = smov [#allocation2]  }
  0xc3   : > { %p2979_p10 = scmp.ne.s32.totalorder %s3433_s28, %s2978_s7  ;;  %s2983_s29 = sshll.u32 %s3115_s17, 4  ;;  %s2984_s29 = int_to_ptr.vmem [resolvable:$false] %s2983_s29 }
  0xc4   : > { %s2985_s22 = scalar_lea.vmem %s2984_s29, 2048  ;;  %p2986_p7 = scmp.lt.s32.totalorder %s3433_s28, %s2984_s29 }
  0xc5   : > { %p2981_p1 = pnand %p2979_p10, %p2965_p8  ;;  %p2987_p11 = scmp.lt.s32.totalorder %s2985_s22, %s2978_s7 }
  0xc7   : > { %p2982_p9 = pneg %p2981_p1  ;;  %p2988_p12 = por %p2987_p11, %p2986_p7 }
  0xc9   : > { %p2989_p13 = pnand %p2988_p12, %p2982_p9 }
  0xcb   : > { %2992 = shalt.err (!%p2989_p13)
}
  0xcc   : > { %2554 = dma.hbm_to_vmem [thread:$0]  (!%p3437_p4), %s3431_s23, 1024, %s3433_s28, %s3441_s15, %s3110_s27, %s3110_s27, %s3111_s6  }
  0xcd   : > { %p3715_p8 = scmp.ne.s32.totalorder %s3702_s25, 0 }
  0xce   : > { %s3475_s13 = sand.u32 (!%p3715_p8), 1, %s3095_s19  }
  0xcf   : > { %529 = sbr.rel (%p3715_p8) target bundleno = 1798 (0x706), region = 76  ;;  %s2279_s5 = sshll.u32 (!%p3715_p8), %s3475_s13, 6 }
  0xd0   : > { %s532_s30 = scalar_lea.sflag (!%p3715_p8), [#allocation3], %s3475_s13  ;;  %s3479_s7 = scalar_lea.vmem (!%p3715_p8), [#allocation2], %s2279_s5 }
  0xd6   : > { %3066 = dma.done.wait (%p3412_p6), %s532_s30, 1024  }
  0xd7   : > { %3068 = vsyncadd (%p3412_p6), %s532_s30, 4294966272  ;;  %p3716_p7 = scmp.eq.s32.totalorder %s3224_s24, 0 }
  0xd9   : > { %3070 = dma.done.wait (%p3716_p7), [#allocation6], 6144   ;;  %p3717_p9 = pmov %p3716_p7 }
  0xda   : > { %p3718_p4 = pmov %p3716_p7 }
  0xdb   : > { %3072 = vsyncadd (%p3717_p9), [#allocation6], 4294961152 }
  0xdc   : > { %3074 = dma.done.wait (%p3718_p4), [#allocation9], 6144   ;;  %p3719_p3 = pmov %p3718_p4 }
  0xde   : > { %3076 = vsyncadd (%p3719_p3), [#allocation9], 4294961152  ;;  %p3720_p0 = pmov %p3719_p3 }
  0xe0   : > { %3078 = dma.done.wait (%p3720_p0), [#allocation12], 2048   ;;  %p3721_p2 = pmov %p3720_p0 }
  0xe1   : > { %v3116_v0 = vmov 0   ;;  %v2623_v1 = vld [vmem:[#allocation5 + $0x4] ss:$8 sps:$4 sm:$0xff]   ;;  %v2625_v2 = vld [vmem:[#allocation5] ss:$8 sps:$4 sm:$0xff]   ;;  %v2649_v19 = vld [vmem:[%s3479_s7 + $0x10] sm:$0xff]  }
  0xe2   : > { %3080 = vsyncadd (%p3721_p2), [#allocation12], 4294965248  ;;  %807 = vmatprep.mubr.bf16.mxu0 %v3116_v0  ;;  %775 = vmatprep.subr.bf16.mxu0 %v2623_v1  ;;  %v2626_v3 = vld [vmem:[#allocation5 + $0x14] ss:$8 sps:$4 sm:$0xff]   ;;  %v2628_v4 = vld [vmem:[#allocation5 + $0x10] ss:$8 sps:$4 sm:$0xff]  }
  0xe3   : > { %776 = vmatpush1.bf16.msra.mxu0 %v2625_v2  ;;  %v2629_v5 = vld [vmem:[#allocation5 + $0x24] ss:$8 sps:$4 sm:$0xff]   ;;  %v2631_v6 = vld [vmem:[#allocation5 + $0x20] ss:$8 sps:$4 sm:$0xff]   ;;  %v2632_v7 = vld [vmem:[#allocation5 + $0x34] ss:$8 sps:$4 sm:$0xff]  }
  0xe4   : > { %777 = vmatprep.subr.bf16.mxu0 %v2626_v3  ;;  %v2634_v8 = vld [vmem:[#allocation5 + $0x30] ss:$8 sps:$4 sm:$0xff]   ;;  %v2635_v9 = vld [vmem:[#allocation5 + $0x44] ss:$8 sps:$4 sm:$0xff]   ;;  %v2637_v10 = vld [vmem:[#allocation5 + $0x40] ss:$8 sps:$4 sm:$0xff]  }
  0xe5   : > { %v2638_v11 = vld [vmem:[#allocation5 + $0x54] ss:$8 sps:$4 sm:$0xff]   ;;  %v2640_v12 = vld [vmem:[#allocation5 + $0x50] ss:$8 sps:$4 sm:$0xff]   ;;  %v2641_v13 = vld [vmem:[#allocation5 + $0x64] ss:$8 sps:$4 sm:$0xff]  }
  0xe6   : > { %v2643_v14 = vld [vmem:[#allocation5 + $0x60] ss:$8 sps:$4 sm:$0xff]   ;;  %v2644_v15 = vld [vmem:[#allocation5 + $0x74] ss:$8 sps:$4 sm:$0xff]   ;;  %v2646_v16 = vld [vmem:[#allocation5 + $0x70] ss:$8 sps:$4 sm:$0xff]  }
  0xe7   : > { %778 = vmatpush1.bf16.msra.mxu0 %v2628_v4  ;;  %v2647_v17 = vld [vmem:[%s3479_s7] sm:$0xff]   ;;  %v2648_v18 = vld [vmem:[%s3479_s7 + $0x8] sm:$0xff]   ;;  %v2650_v20 = vld [vmem:[%s3479_s7 + $0x18] sm:$0xff]   ;;  %s3722_s16 = sld [smem:[#allocation25_spill]]  ;;  %s3723_s29 = sld [smem:[#allocation26_spill]]  ;;  %vm3118_vm0 = vmmov 0  }
  0xe8   : > { %779 = vmatprep.subr.bf16.mxu0 %v2629_v5  ;;  %v2651_v21 = vld [vmem:[%s3479_s7 + $0x20] sm:$0xff]   ;;  %v2652_v22 = vld [vmem:[%s3479_s7 + $0x28] sm:$0xff]   ;;  %v2653_v23 = vld [vmem:[%s3479_s7 + $0x30] sm:$0xff]   ;;  %s2286_s22 = sshll.u32 %s3475_s13, 4  ;;  %s3724_s25 = sld [smem:[#allocation27_spill]] }
  0xe9   : > { %v2654_v24 = vld [vmem:[%s3479_s7 + $0x38] sm:$0xff]   ;;  %v2655_v25 = vld [vmem:[#allocation7 + $0x4] ss:$8 sps:$4 sm:$0xff]   ;;  %v2657_v26 = vld [vmem:[#allocation7] ss:$8 sps:$4 sm:$0xff]   ;;  %s3555_s5 = scalar_lea.vmem [#allocation14], %s2286_s22 }
  0xea   : > { %1146 = vmatprep.subr.bf16.mxu1 %v2655_v25  ;;  %v2658_v27 = vld [vmem:[#allocation7 + $0x14] ss:$8 sps:$4 sm:$0xff]   ;;  %v2660_v28 = vld [vmem:[#allocation7 + $0x10] ss:$8 sps:$4 sm:$0xff]   ;;  %v2661_v29 = vld [vmem:[#allocation7 + $0x24] ss:$8 sps:$4 sm:$0xff]  }
  0xeb   : > { %780 = vmatpush1.bf16.msra.mxu0 %v2631_v6  ;;  %1147 = vmatpush1.bf16.msra.mxu1 %v2657_v26  ;;  %v2663_v30 = vld [vmem:[#allocation7 + $0x20] ss:$8 sps:$4 sm:$0xff]   ;;  %v2664_v31 = vld [vmem:[#allocation7 + $0x34] ss:$8 sps:$4 sm:$0xff]   ;;  %v2666_v32 = vld [vmem:[#allocation7 + $0x30] ss:$8 sps:$4 sm:$0xff]  }
  0xec   : > { %781 = vmatprep.subr.bf16.mxu0 %v2632_v7  ;;  %1148 = vmatprep.subr.bf16.mxu1 %v2658_v27  ;;  %v2667_v33 = vld [vmem:[#allocation7 + $0x44] ss:$8 sps:$4 sm:$0xff]   ;;  %v2669_v34 = vld [vmem:[#allocation7 + $0x40] ss:$8 sps:$4 sm:$0xff]   ;;  %v2670_v35 = vld [vmem:[#allocation7 + $0x54] ss:$8 sps:$4 sm:$0xff]  }
  0xed   : > { %v2672_v36 = vld [vmem:[#allocation7 + $0x50] ss:$8 sps:$4 sm:$0xff]   ;;  %v2673_v37 = vld [vmem:[#allocation7 + $0x64] ss:$8 sps:$4 sm:$0xff]   ;;  %v2675_v38 = vld [vmem:[#allocation7 + $0x60] ss:$8 sps:$4 sm:$0xff]  }
  0xee   : > { %v2676_v39 = vld [vmem:[#allocation7 + $0x74] ss:$8 sps:$4 sm:$0xff]   ;;  %v2678_v40 = vld [vmem:[#allocation7 + $0x70] ss:$8 sps:$4 sm:$0xff]   ;;  %v2679_v41 = vld [vmem:[#allocation7 + $0x84] ss:$8 sps:$4 sm:$0xff]  }
  0xef   : > { %782 = vmatpush1.bf16.msra.mxu0 %v2634_v8  ;;  %1149 = vmatpush1.bf16.msra.mxu1 %v2660_v28  ;;  %v2681_v42 = vld [vmem:[#allocation7 + $0x80] ss:$8 sps:$4 sm:$0xff]   ;;  %v2682_v43 = vld [vmem:[#allocation7 + $0x94] ss:$8 sps:$4 sm:$0xff]   ;;  %v2684_v44 = vld [vmem:[#allocation7 + $0x90] ss:$8 sps:$4 sm:$0xff]  }
  0xf0   : > { %783 = vmatprep.subr.bf16.mxu0 %v2635_v9  ;;  %1150 = vmatprep.subr.bf16.mxu1 %v2661_v29  ;;  %v2685_v45 = vld [vmem:[#allocation7 + $0xa4] ss:$8 sps:$4 sm:$0xff]   ;;  %v2687_v46 = vld [vmem:[#allocation7 + $0xa0] ss:$8 sps:$4 sm:$0xff]   ;;  %v2688_v47 = vld [vmem:[#allocation7 + $0xb4] ss:$8 sps:$4 sm:$0xff]  }
  0xf1   : > { %v2690_v48 = vld [vmem:[#allocation7 + $0xb0] ss:$8 sps:$4 sm:$0xff]   ;;  %v2691_v49 = vld [vmem:[#allocation7 + $0xc4] ss:$8 sps:$4 sm:$0xff]   ;;  %v2693_v50 = vld [vmem:[#allocation7 + $0xc0] ss:$8 sps:$4 sm:$0xff]  }
  0xf2   : > { %v2694_v51 = vld [vmem:[#allocation7 + $0xd4] ss:$8 sps:$4 sm:$0xff]   ;;  %v2696_v52 = vld [vmem:[#allocation7 + $0xd0] ss:$8 sps:$4 sm:$0xff]   ;;  %v2697_v53 = vld [vmem:[#allocation7 + $0xe4] ss:$8 sps:$4 sm:$0xff]  }
  0xf3   : > { %784 = vmatpush1.bf16.msra.mxu0 %v2637_v10  ;;  %1151 = vmatpush1.bf16.msra.mxu1 %v2663_v30  ;;  %v2699_v54 = vld [vmem:[#allocation7 + $0xe0] ss:$8 sps:$4 sm:$0xff]   ;;  %v2700_v55 = vld [vmem:[#allocation7 + $0xf4] ss:$8 sps:$4 sm:$0xff]   ;;  %v2702_v56 = vld [vmem:[#allocation7 + $0xf0] ss:$8 sps:$4 sm:$0xff]  }
  0xf4   : > { %785 = vmatprep.subr.bf16.mxu0 %v2638_v11  ;;  %1152 = vmatprep.subr.bf16.mxu1 %v2664_v31  ;;  %v2703_v57 = vld [vmem:[#allocation8] ss:$8 sps:$4 sm:$0xff]   ;;  %v2705_v58 = vld [vmem:[#allocation8 + $0x4] ss:$8 sps:$4 sm:$0xff]   ;;  %v2708_v59 = vld [vmem:[#allocation8 + $0x14] ss:$8 sps:$4 sm:$0xff]  }
  0xf5   : > { %v2706_v60 = vld [vmem:[#allocation8 + $0x10] ss:$8 sps:$4 sm:$0xff]   ;;  %v2711_v61 = vld [vmem:[#allocation8 + $0x24] ss:$8 sps:$4 sm:$0xff]   ;;  %v2709_v62 = vld [vmem:[#allocation8 + $0x20] ss:$8 sps:$4 sm:$0xff]  }
  0xf6   : > { %v2714_v63 = vld [vmem:[#allocation8 + $0x34] ss:$8 sps:$4 sm:$0xff]   ;;  %v2717_v1 = vld [vmem:[#allocation8 + $0x44] ss:$8 sps:$4 sm:$0xff]   ;;  %v2715_v2 = vld [vmem:[#allocation8 + $0x40] ss:$8 sps:$4 sm:$0xff]  }
  0xf7   : > { %786 = vmatpush1.bf16.msra.mxu0 %v2640_v12  ;;  %1153 = vmatpush1.bf16.msra.mxu1 %v2666_v32  ;;  %s3725_s1 = sld [smem:[#allocation28_spill]]  ;;  %s2088_s23 = sshll.u32 %s3555_s5, 4  ;;  %s3573_s23 = int_to_ptr.vmem [resolvable:$true] %s2088_s23 }
  0xf8   : > { %787 = vmatprep.subr.bf16.mxu0 %v2641_v13  ;;  %1154 = vmatprep.subr.bf16.mxu1 %v2667_v33  ;;  %s2420_s28 = sshll.u32 %s3224_s24, 8  ;;  %s3726_s17 = sld [smem:[#allocation30_spill]] }
  0xf9   : > { %s2070_s30 = scalar_lea.sflag [#allocation4], %s3475_s13  ;;  %s2993_s7 = scalar_lea.vmem %s3573_s23, 256 }
  0xfa   : > { %p2994_p6 = scmp.ne.s32.totalorder %s3573_s23, %s2993_s7  ;;  %p3727_p5 = scmp.ne.s32.totalorder %s3712_s10, 0 }
  0xfb   : > { %788 = vmatpush1.bf16.msra.mxu0 %v2643_v14  ;;  %1155 = vmatpush1.bf16.msra.mxu1 %v2669_v34 }
  0xfc   : > { %789 = vmatprep.subr.bf16.mxu0 %v2644_v15  ;;  %1156 = vmatprep.subr.bf16.mxu1 %v2670_v35  ;;  %p2995_p10 = pnand %p2994_p6, %p3727_p5 }
  0xfe   : > { %p2996_p1 = pneg %p2995_p10 }
  0xff   : > { %790 = vmatpush1.bf16.msra.mxu0 %v2646_v16  ;;  %1157 = vmatpush1.bf16.msra.mxu1 %v2672_v36 }
 0x100   : > { %1158 = vmatprep.subr.bf16.mxu1 %v2673_v37  ;;  %1472 = vmatprep.subr.bf16.mxu0 %v2705_v58 }
 0x102   : > { %808 = vmatmul.mubr.bf16.vlgmr.msra.gmra.mrb[0].mxu0 %v2647_v17 }
 0x103   : > { %817 = vmatprep.mubr.bf16.mxu0 %v3116_v0  ;;  %1159 = vmatpush1.bf16.msra.mxu1 %v2675_v38 }
 0x104   : > { %1160 = vmatprep.subr.bf16.mxu1 %v2676_v39  ;;  %1473 = vmatpush1.bf16.msra.mxu0 %v2703_v57 }
 0x105   : > { %1474 = vmatprep.subr.bf16.mxu0 %v2708_v59 }
 0x107   : > { %1161 = vmatpush1.bf16.msra.mxu1 %v2678_v40 }
 0x108   : > { %1162 = vmatprep.subr.bf16.mxu1 %v2679_v41  ;;  %1475 = vmatpush1.bf16.msra.mxu0 %v2706_v60 }
 0x109   : > { %1476 = vmatprep.subr.bf16.mxu0 %v2711_v61 }
 0x10a   : > { %818 = vmatmul.mubr.bf16.gmra.mrb[4].mxu0 %v2648_v18 }
 0x10b   : > { %827 = vmatprep.mubr.bf16.mxu0 %v3116_v0  ;;  %1163 = vmatpush1.bf16.msra.mxu1 %v2681_v42 }
 0x10c   : > { %1164 = vmatprep.subr.bf16.mxu1 %v2682_v43  ;;  %1477 = vmatpush1.bf16.msra.mxu0 %v2709_v62 }
 0x10d   : > { %1478 = vmatprep.subr.bf16.mxu0 %v2714_v63 }
 0x10f   : > { %1165 = vmatpush1.bf16.msra.mxu1 %v2684_v44 }
 0x110   : > { %1166 = vmatprep.subr.bf16.mxu1 %v2685_v45 }
 0x112   : > { %828 = vmatmul.mubr.bf16.gmra.mrb[8].mxu0 %v2649_v19 }
 0x113   : > { %837 = vmatprep.mubr.bf16.mxu0 %v3116_v0  ;;  %1167 = vmatpush1.bf16.msra.mxu1 %v2687_v46 }
 0x114   : > { %1168 = vmatprep.subr.bf16.mxu1 %v2688_v47 }
 0x117   : > { %1169 = vmatpush1.bf16.msra.mxu1 %v2690_v48 }
 0x118   : > { %1170 = vmatprep.subr.bf16.mxu1 %v2691_v49 }
 0x11a   : > { %838 = vmatmul.mubr.bf16.gmra.mrb[12].mxu0 %v2650_v20 }
 0x11b   : > { %847 = vmatprep.mubr.bf16.mxu0 %v3116_v0  ;;  %1171 = vmatpush1.bf16.msra.mxu1 %v2693_v50 }
 0x11c   : > { %1172 = vmatprep.subr.bf16.mxu1 %v2694_v51 }
 0x11f   : > { %1173 = vmatpush1.bf16.msra.mxu1 %v2696_v52 }
 0x120   : > { %1174 = vmatprep.subr.bf16.mxu1 %v2697_v53 }
 0x122   : > { %848 = vmatmul.mubr.bf16.gmra.mrb[16].mxu0 %v2651_v21 }
 0x123   : > { %857 = vmatprep.mubr.bf16.mxu0 %v3116_v0  ;;  %1175 = vmatpush1.bf16.msra.mxu1 %v2699_v54 }
 0x124   : > { %1176 = vmatprep.subr.bf16.mxu1 %v2700_v55 }
 0x127   : > { %1177 = vmatpush1.bf16.msra.mxu1 %v2702_v56 }
 0x12a   : > { %858 = vmatmul.mubr.bf16.gmra.mrb[20].mxu0 %v2652_v22 }
 0x12b   : > { %867 = vmatprep.mubr.bf16.mxu0 %v3116_v0 }
 0x132   : > { %868 = vmatmul.mubr.bf16.gmra.mrb[24].mxu0 %v2653_v23 }
 0x133   : > { %877 = vmatprep.mubr.bf16.mxu0 %v3116_v0  ;;  %v2712_v0 = vld [vmem:[#allocation8 + $0x30] ss:$8 sps:$4 sm:$0xff]  }
 0x134   : > { %1479 = vmatpush1.bf16.msra.mxu0 %v2712_v0 }
 0x135   : > { %1480 = vmatprep.subr.bf16.mxu0 %v2717_v1 }
 0x138   : > { %1481 = vmatpush1.bf16.msra.mxu0 %v2715_v2 }
 0x13a   : > { %878 = vmatmul.mubr.bf16.gmra.mrb[28].mxu0 %v2654_v24 }
 0x1d5   : > { %v809_v3 = vpop.f32.mrb[0].mxu0 }
 0x1d6   : > { %v811_v4 = vpop.f32.mrb[1].mxu0  ;;  %v888_v8 = vmax.f32 %v809_v3, 0.0 }
 0x1d7   : > { %v813_v5 = vpop.f32.mrb[2].mxu0  ;;  %v889_v11 = vmax.f32 %v811_v4, 0.0 }
 0x1d8   : > { %v815_v6 = vpop.f32.mrb[3].mxu0  ;;  %v890_v14 = vmax.f32 %v813_v5, 0.0 }
 0x1d9   : > { %v891_v18 = vmax.f32 %v815_v6, 0.0 }
 0x1dd   : > { %v819_v7 = vpop.f32.mrb[4].mxu0 }
 0x1de   : > { %v892_v9 = vmax.f32 %v819_v7, 0.0  ;;  %v821_v10 = vpop.f32.mrb[5].mxu0 }
 0x1df   : > { %v893_v12 = vmax.f32 %v821_v10, 0.0  ;;  %v823_v13 = vpop.f32.mrb[6].mxu0 }
 0x1e0   : > { %v920_v15 = vadd.f32 %v892_v9, %v888_v8  ;;  %v894_v16 = vmax.f32 %v823_v13, 0.0  ;;  %v825_v17 = vpop.f32.mrb[7].mxu0 }
 0x1e1   : > { %v921_v19 = vadd.f32 %v893_v12, %v889_v11  ;;  %v895_v20 = vmax.f32 %v825_v17, 0.0 }
 0x1e2   : > { %v922_v21 = vadd.f32 %v894_v16, %v890_v14 }
 0x1e3   : > { %v923_v22 = vadd.f32 %v895_v20, %v891_v18 }
 0x1e5   : > { %v829_v23 = vpop.f32.mrb[8].mxu0 }
 0x1e6   : > { %v896_v24 = vmax.f32 %v829_v23, 0.0  ;;  %v831_v25 = vpop.f32.mrb[9].mxu0 }
 0x1e7   : > { %v897_v26 = vmax.f32 %v831_v25, 0.0  ;;  %v833_v27 = vpop.f32.mrb[10].mxu0 }
 0x1e8   : > { %v924_v28 = vadd.f32 %v920_v15, %v896_v24  ;;  %v898_v29 = vmax.f32 %v833_v27, 0.0  ;;  %v835_v30 = vpop.f32.mrb[11].mxu0 }
 0x1e9   : > { %v925_v31 = vadd.f32 %v921_v19, %v897_v26  ;;  %v899_v32 = vmax.f32 %v835_v30, 0.0 }
 0x1ea   : > { %v926_v33 = vadd.f32 %v922_v21, %v898_v29 }
 0x1eb   : > { %v927_v34 = vadd.f32 %v923_v22, %v899_v32 }
 0x1ed   : > { %v839_v35 = vpop.f32.mrb[12].mxu0 }
 0x1ee   : > { %v900_v36 = vmax.f32 %v839_v35, 0.0  ;;  %v841_v37 = vpop.f32.mrb[13].mxu0 }
 0x1ef   : > { %v901_v38 = vmax.f32 %v841_v37, 0.0  ;;  %v843_v39 = vpop.f32.mrb[14].mxu0  ;;  %v2720_v37 = vld [vmem:[#allocation8 + $0x54] ss:$8 sps:$4 sm:$0xff]  }
 0x1f0   : > { %v928_v40 = vadd.f32 %v924_v28, %v900_v36  ;;  %v902_v41 = vmax.f32 %v843_v39, 0.0  ;;  %v845_v42 = vpop.f32.mrb[15].mxu0  ;;  %1482 = vmatprep.subr.bf16.mxu0 %v2720_v37  ;;  %v2723_v39 = vld [vmem:[#allocation8 + $0x64] ss:$8 sps:$4 sm:$0xff]  }
 0x1f1   : > { %v929_v43 = vadd.f32 %v925_v31, %v901_v38  ;;  %v903_v44 = vmax.f32 %v845_v42, 0.0  ;;  %v2718_v38 = vld [vmem:[#allocation8 + $0x50] ss:$8 sps:$4 sm:$0xff]  }
 0x1f2   : > { %v930_v45 = vadd.f32 %v926_v33, %v902_v41  ;;  %1483 = vmatpush1.bf16.msra.mxu0 %v2718_v38  ;;  %v2726_v41 = vld [vmem:[#allocation8 + $0x74] ss:$8 sps:$4 sm:$0xff]   ;;  %v2724_v42 = vld [vmem:[#allocation8 + $0x70] ss:$8 sps:$4 sm:$0xff]  }
 0x1f3   : > { %v931_v46 = vadd.f32 %v927_v34, %v903_v44  ;;  %1484 = vmatprep.subr.bf16.mxu0 %v2723_v39  ;;  %v2727_v44 = vld [vmem:[#allocation8 + $0x80] ss:$8 sps:$4 sm:$0xff]  }
 0x1f5   : > { %v849_v47 = vpop.f32.mrb[16].mxu0 }
 0x1f6   : > { %v904_v48 = vmax.f32 %v849_v47, 0.0  ;;  %v851_v49 = vpop.f32.mrb[17].mxu0  ;;  %v2735_v47 = vld [vmem:[#allocation8 + $0xa4] ss:$8 sps:$4 sm:$0xff]  }
 0x1f7   : > { %v905_v50 = vmax.f32 %v851_v49, 0.0  ;;  %v853_v51 = vpop.f32.mrb[18].mxu0  ;;  %v2738_v49 = vld [vmem:[#allocation8 + $0xb4] ss:$8 sps:$4 sm:$0xff]  }
 0x1f8   : > { %v932_v52 = vadd.f32 %v928_v40, %v904_v48  ;;  %v906_v53 = vmax.f32 %v853_v51, 0.0  ;;  %v855_v54 = vpop.f32.mrb[19].mxu0  ;;  %v2721_v40 = vld [vmem:[#allocation8 + $0x60] ss:$8 sps:$4 sm:$0xff]   ;;  %v2741_v51 = vld [vmem:[#allocation8 + $0xc4] ss:$8 sps:$4 sm:$0xff]  }
 0x1f9   : > { %v933_v55 = vadd.f32 %v929_v43, %v905_v50  ;;  %v907_v56 = vmax.f32 %v855_v54, 0.0  ;;  %1485 = vmatpush1.bf16.msra.mxu0 %v2721_v40  ;;  %v2729_v43 = vld [vmem:[#allocation8 + $0x84] ss:$8 sps:$4 sm:$0xff]   ;;  %v2733_v48 = vld [vmem:[#allocation8 + $0xa0] ss:$8 sps:$4 sm:$0xff]  }
 0x1fa   : > { %v934_v57 = vadd.f32 %v930_v45, %v906_v53  ;;  %1486 = vmatprep.subr.bf16.mxu0 %v2726_v41  ;;  %v2732_v45 = vld [vmem:[#allocation8 + $0x94] ss:$8 sps:$4 sm:$0xff]   ;;  %v2736_v50 = vld [vmem:[#allocation8 + $0xb0] ss:$8 sps:$4 sm:$0xff]  }
 0x1fb   : > { %v935_v58 = vadd.f32 %v931_v46, %v907_v56  ;;  %v2730_v46 = vld [vmem:[#allocation8 + $0x90] ss:$8 sps:$4 sm:$0xff]   ;;  %v2744_v53 = vld [vmem:[#allocation8 + $0xd4] ss:$8 sps:$4 sm:$0xff]   ;;  %v2745_v56 = vld [vmem:[#allocation8 + $0xe0] ss:$8 sps:$4 sm:$0xff]  }
 0x1fc   : > { %v2742_v54 = vld [vmem:[#allocation8 + $0xd0] ss:$8 sps:$4 sm:$0xff]  }
 0x1fd   : > { %v859_v59 = vpop.f32.mrb[20].mxu0  ;;  %1487 = vmatpush1.bf16.msra.mxu0 %v2724_v42  ;;  %v1245_v42 = vlaneseq }
 0x1fe   : > { %v908_v60 = vmax.f32 %v859_v59, 0.0  ;;  %v861_v61 = vpop.f32.mrb[21].mxu0  ;;  %1488 = vmatprep.subr.bf16.mxu0 %v2729_v43 }
 0x1ff   : > { %v909_v62 = vmax.f32 %v861_v61, 0.0  ;;  %v863_v63 = vpop.f32.mrb[22].mxu0 }
 0x200   : > { %v936_v0 = vadd.f32 %v932_v52, %v908_v60  ;;  %v910_v1 = vmax.f32 %v863_v63, 0.0  ;;  %v865_v2 = vpop.f32.mrb[23].mxu0  ;;  %v2739_v52 = vld [vmem:[#allocation8 + $0xc0] ss:$8 sps:$4 sm:$0xff]  }
 0x201   : > { %v937_v3 = vadd.f32 %v933_v55, %v909_v62  ;;  %v911_v4 = vmax.f32 %v865_v2, 0.0  ;;  %1489 = vmatpush1.bf16.msra.mxu0 %v2727_v44  ;;  %v2747_v55 = vld [vmem:[#allocation8 + $0xe4] ss:$8 sps:$4 sm:$0xff]  }
 0x202   : > { %v938_v5 = vadd.f32 %v934_v57, %v910_v1  ;;  %1490 = vmatprep.subr.bf16.mxu0 %v2732_v45  ;;  %v2748_v57 = vld [vmem:[#allocation8 + $0xf0] ss:$8 sps:$4 sm:$0xff]  }
 0x203   : > { %v939_v6 = vadd.f32 %v935_v58, %v911_v4  ;;  %v2750_v58 = vld [vmem:[#allocation8 + $0xf4] ss:$8 sps:$4 sm:$0xff]  }
 0x205   : > { %v869_v7 = vpop.f32.mrb[24].mxu0  ;;  %1491 = vmatpush1.bf16.msra.mxu0 %v2730_v46  ;;  %v1246_v46 = vshrl.u32 %v1245_v42, 7 }
 0x206   : > { %v912_v8 = vmax.f32 %v869_v7, 0.0  ;;  %v871_v9 = vpop.f32.mrb[25].mxu0  ;;  %1492 = vmatprep.subr.bf16.mxu0 %v2735_v47 }
 0x207   : > { %v913_v10 = vmax.f32 %v871_v9, 0.0  ;;  %v873_v11 = vpop.f32.mrb[26].mxu0  ;;  %v3517_v47 = vsub.s32 0, %v1246_v46 }
 0x208   : > { %v940_v12 = vadd.f32 %v936_v0, %v912_v8  ;;  %v914_v13 = vmax.f32 %v873_v11, 0.0  ;;  %v875_v14 = vpop.f32.mrb[27].mxu0 }
 0x209   : > { %v941_v15 = vadd.f32 %v937_v3, %v913_v10  ;;  %v915_v16 = vmax.f32 %v875_v14, 0.0  ;;  %1493 = vmatpush1.bf16.msra.mxu0 %v2733_v48  ;;  %v1189_v48 = vld [vmem:[%s3672_s3] sm:$0x3] }
 0x20a   : > { %v942_v17 = vadd.f32 %v938_v5, %v914_v13  ;;  %1494 = vmatprep.subr.bf16.mxu0 %v2738_v49  ;;  %v3522_v49 = vsub.s32 1, %v1246_v46 }
 0x20b   : > { %v943_v18 = vadd.f32 %v939_v6, %v915_v16 }
 0x20d   : > { %v879_v19 = vpop.f32.mrb[28].mxu0  ;;  %1495 = vmatpush1.bf16.msra.mxu0 %v2736_v50  ;;  %v1190_v50 = vld [vmem:[%s3673_s4] sm:$0x3] }
 0x20e   : > { %v916_v20 = vmax.f32 %v879_v19, 0.0  ;;  %v881_v21 = vpop.f32.mrb[29].mxu0  ;;  %1496 = vmatprep.subr.bf16.mxu0 %v2741_v51  ;;  %v1248_v51 = vrot.slane %v1189_v48, %v3517_v47 }
 0x20f   : > { %v917_v22 = vmax.f32 %v881_v21, 0.0  ;;  %v883_v23 = vpop.f32.mrb[30].mxu0 }
 0x210   : > { %v944_v24 = vadd.f32 %v940_v12, %v916_v20  ;;  %v918_v25 = vmax.f32 %v883_v23, 0.0  ;;  %v885_v26 = vpop.f32.mrb[31].mxu0 }
 0x211   : > { %v919_v27 = vmax.f32 %v885_v26, 0.0  ;;  %v945_v28 = vadd.f32 %v941_v15, %v917_v22  ;;  %1497 = vmatpush1.bf16.msra.mxu0 %v2739_v52 }
 0x212   : > { %v946_v29 = vadd.f32 %v942_v17, %v918_v25  ;;  %v948_v31 = vmul.f32 0.125, %v944_v24  ;;  %1498 = vmatprep.subr.bf16.mxu0 %v2744_v53  ;;  %v1252_v53 = vrot.slane %v1189_v48, %v3522_v49 }
 0x213   : > { %v947_v30 = vadd.f32 %v943_v18, %v919_v27  ;;  %v949_v33 = vmul.f32 0.125, %v945_v28 }
 0x214   : > { %v950_v32 = vmul.f32 0.125, %v946_v29 }
 0x215   : > { %v951_v34 = vmul.f32 0.125, %v947_v30  ;;  %1499 = vmatpush1.bf16.msra.mxu0 %v2742_v54 }
 0x216   : > { %v952_v35 = vpack.c.bf16 %v950_v32, %v948_v31  ;;  %1500 = vmatprep.subr.bf16.mxu0 %v2747_v55 }
 0x217   : > { %v953_v36 = vpack.c.bf16 %v951_v34, %v949_v33 }
 0x219   : > { %1178 = vmatprep.mubr.bf16.mxu1 %v953_v36  ;;  %1501 = vmatpush1.bf16.msra.mxu0 %v2745_v56 }
 0x21a   : > { %1179 = vmatmul.mubr.bf16.vlgmr.msra.gmra.mrb[0].mxu1 %v952_v35  ;;  %1502 = vmatprep.subr.bf16.mxu0 %v2750_v58 }
 0x21d   : > { %1503 = vmatpush1.bf16.msra.mxu0 %v2748_v57  ;;  %v1263_v57 = vrot.slane %v1190_v50, %v3517_v47 }
 0x2ed   : > { %v3505_v59 = vpop.f32.mrb[0].mxu1 }
 0x2ee   : > { %v3507_v60 = vpop.f32.mrb[1].mxu1  ;;  %v1208_v62 = vmul.f32 %v3505_v59, %v3505_v59 }
 0x2ef   : > { %v1184_v61 = vpop.f32.mrb[2].mxu1  ;;  %v1209_v2 = vmul.f32 %v3507_v60, %v3507_v60 }
 0x2f0   : > { %v1191_v63 = vadd.f32 %v1184_v61, %v3505_v59  ;;  %v1210_v0 = vmul.f32 %v1184_v61, %v1184_v61  ;;  %v1186_v1 = vpop.f32.mrb[3].mxu1 }
 0x2f1   : > { %v1198_v3 = vadd.f32 %v1186_v1, %v3507_v60  ;;  %v1211_v4 = vmul.f32 %v1186_v1, %v1186_v1 }
 0x2f2   : > { %v1192_v5 = vrot.slane %v1191_v63, 4  ;;  %v1212_v6 = vadd.f32 %v1210_v0, %v1208_v62 }
 0x2f3   : > { %v1199_v7 = vrot.slane %v1198_v3, 4  ;;  %v1219_v8 = vadd.f32 %v1211_v4, %v1209_v2 }
 0x2f4   : > { %v1193_v9 = vadd.f32 %v1192_v5, %v1191_v63  ;;  %v1213_v10 = vrot.slane %v1212_v6, 4 }
 0x2f5   : > { %v1200_v11 = vadd.f32 %v1199_v7, %v1198_v3  ;;  %v1220_v12 = vrot.slane %v1219_v8, 4 }
 0x2f6   : > { %v1194_v13 = vrot.slane %v1193_v9, 2  ;;  %v1214_v14 = vadd.f32 %v1213_v10, %v1212_v6 }
 0x2f7   : > { %v1201_v15 = vrot.slane %v1200_v11, 2  ;;  %v1221_v16 = vadd.f32 %v1220_v12, %v1219_v8  ;;  %v2752_v12 = vld [vmem:[#allocation10] sm:$0xff]  }
 0x2f8   : > { %v1195_v17 = vadd.f32 %v1194_v13, %v1193_v9  ;;  %v1215_v18 = vrot.slane %v1214_v14, 2  ;;  %v2753_v13 = vld [vmem:[#allocation10 + $0x48] sm:$0xff]  }
 0x2f9   : > { %v1202_v19 = vadd.f32 %v1201_v15, %v1200_v11  ;;  %v1222_v20 = vrot.slane %v1221_v16, 2  ;;  %v2751_v11 = vld [vmem:[#allocation10 + $0x40] sm:$0xff]   ;;  %v2755_v15 = vld [vmem:[#allocation10 + $0x50] sm:$0xff]  }
 0x2fa   : > { %v1196_v21 = vrot.slane %v1195_v17, 1  ;;  %v1216_v22 = vadd.f32 %v1215_v18, %v1214_v14  ;;  %2422 = vmatprep.subr.bf16.mxu1 %v2751_v11  ;;  %v2754_v14 = vld [vmem:[#allocation10 + $0x8] sm:$0xff]   ;;  %v2758_v18 = vld [vmem:[#allocation10 + $0x18] sm:$0xff]  }
 0x2fb   : > { %v1203_v23 = vrot.slane %v1202_v19, 1  ;;  %v1223_v24 = vadd.f32 %v1222_v20, %v1221_v16  ;;  %2423 = vmatpush3.bf16.msra.mxu1 %v2752_v12  ;;  %v2756_v16 = vld [vmem:[#allocation10 + $0x10] sm:$0xff]   ;;  %v2760_v20 = vld [vmem:[#allocation10 + $0x20] sm:$0xff]  }
 0x2fc   : > { %v1197_v25 = vadd.f32 %v1196_v21, %v1195_v17  ;;  %v1217_v26 = vrot.slane %v1216_v22, 1  ;;  %2424 = vmatprep.subr.bf16.mxu1 %v2753_v13  ;;  %v2757_v17 = vld [vmem:[#allocation10 + $0x58] sm:$0xff]   ;;  %v2761_v21 = vld [vmem:[#allocation10 + $0x68] sm:$0xff]  }
 0x2fd   : > { %v1204_v27 = vadd.f32 %v1203_v23, %v1202_v19  ;;  %v1224_v28 = vrot.slane %v1223_v24, 1  ;;  %v2759_v19 = vld [vmem:[#allocation10 + $0x60] sm:$0xff]   ;;  %v2763_v23 = vld [vmem:[#allocation10 + $0x70] sm:$0xff]  }
 0x2fe   : > { %v1206_v29 = vmul.f32 0.0625, %v1197_v25  ;;  %v1218_v30 = vadd.f32 %v1217_v26, %v1216_v22  ;;  %v2762_v22 = vld [vmem:[#allocation10 + $0x28] sm:$0xff]   ;;  %v2765_v25 = vld [vmem:[#allocation10 + $0x78] sm:$0xff]  }
 0x2ff   : > { %v1207_v31 = vmul.f32 0.0625, %v1204_v27  ;;  %v1225_v32 = vadd.f32 %v1224_v28, %v1223_v24  ;;  %2425 = vmatpush3.bf16.msra.mxu1 %v2754_v14  ;;  %v2764_v24 = vld [vmem:[#allocation10 + $0x30] sm:$0xff]   ;;  %v2766_v26 = vld [vmem:[#allocation10 + $0x38] sm:$0xff]  }
 0x300   : > { %v1226_v33 = vmul.f32 0.0625, %v1218_v30  ;;  %v1228_v34 = vmul.f32 %v1206_v29, %v1206_v29  ;;  %v1232_v35 = vsub.f32 %v3505_v59, %v1206_v29  ;;  %v1234_v36 = vsub.f32 %v1184_v61, %v1206_v29  ;;  %2426 = vmatprep.subr.bf16.mxu1 %v2755_v15  ;;  %v1515_v15 = vld [vmem:[%s3722_s16] sm:$0x3] }
 0x301   : > { %v1227_v37 = vmul.f32 0.0625, %v1225_v32  ;;  %v1229_v38 = vmul.f32 %v1207_v31, %v1207_v31  ;;  %v1235_v39 = vsub.f32 %v1186_v1, %v1207_v31  ;;  %v1233_v40 = vsub.f32 %v3507_v60, %v1207_v31 }
 0x302   : > { %v1230_v41 = vsub.f32 %v1226_v33, %v1228_v34  ;;  %v1267_v60 = vrot.slane %v1190_v50, %v3522_v49 }
 0x303   : > { %v1231_v43 = vsub.f32 %v1227_v37, %v1229_v38  ;;  %2427 = vmatpush3.bf16.msra.mxu1 %v2756_v16  ;;  %v1516_v16 = vld [vmem:[%s3723_s29] sm:$0x3]  ;;  %s3581_s29 = scalar_lea.hbm %s3726_s17, %s2420_s28 }
 0x304   : > { %v1236_v44 = vadd.f32 1e-05, %v1230_v41  ;;  %2428 = vmatprep.subr.bf16.mxu1 %v2757_v17  ;;  %v1573_v17 = vrot.slane %v1515_v15, %v3517_v47 }
 0x305   : > { %v1237_v45 = vadd.f32 1e-05, %v1231_v43 }
 0x306   : > { %2783 = vrsqrt.f32 %v1236_v44 }
 0x307   : > { %2785 = vrsqrt.f32 %v1237_v45  ;;  %2429 = vmatpush3.bf16.msra.mxu1 %v2758_v18 }
 0x308   : > { %2430 = vmatprep.subr.bf16.mxu1 %v2759_v19  ;;  %v1577_v19 = vrot.slane %v1515_v15, %v3522_v49 }
 0x30b   : > { %2431 = vmatpush3.bf16.msra.mxu1 %v2760_v20 }
 0x30c   : > { %2432 = vmatprep.subr.bf16.mxu1 %v2761_v21 }
 0x30f   : > { %2433 = vmatpush3.bf16.msra.mxu1 %v2762_v22 }
 0x310   : > { %v2784_v52 = vpop.eup %2783  ;;  %2434 = vmatprep.subr.bf16.mxu1 %v2763_v23  ;;  %v1588_v23 = vrot.slane %v1516_v16, %v3517_v47  ;;  %v2767_v47 = vld [vmem:[#allocation11] sm:$0xff]  }
 0x311   : > { %v2786_v54 = vpop.eup %2785  ;;  %v1240_v55 = vmul.f32 %v2784_v52, %v1232_v35  ;;  %v1242_v56 = vmul.f32 %v2784_v52, %v1234_v36 }
 0x312   : > { %v1243_v58 = vmul.f32 %v2786_v54, %v1235_v39  ;;  %v1241_v59 = vmul.f32 %v2786_v54, %v1233_v40 }
 0x313   : > { %v1255_v61 = vmul.f32 %v1248_v51, %v1240_v55  ;;  %v1257_v62 = vmul.f32 %v1248_v51, %v1242_v56  ;;  %2435 = vmatpush3.bf16.msra.mxu1 %v2764_v24 }
 0x314   : > { %v1258_v63 = vmul.f32 %v1252_v53, %v1243_v58  ;;  %v1256_v0 = vmul.f32 %v1252_v53, %v1241_v59  ;;  %2436 = vmatprep.subr.bf16.mxu1 %v2765_v25 }
 0x315   : > { %v1270_v1 = vadd.f32 %v1263_v57, %v1255_v61  ;;  %v1272_v2 = vadd.f32 %v1263_v57, %v1257_v62 }
 0x316   : > { %v1271_v3 = vadd.f32 %v1267_v60, %v1256_v0  ;;  %v1273_v4 = vadd.f32 %v1267_v60, %v1258_v63 }
 0x317   : > { %v1276_v5 = vmax.f32 %v1272_v2, 0.0  ;;  %v1274_v6 = vmax.f32 %v1270_v1, 0.0  ;;  %2437 = vmatpush3.bf16.msra.mxu1 %v2766_v26  ;;  %v1592_v26 = vrot.slane %v1516_v16, %v3522_v49  ;;  %v2768_v49 = vld [vmem:[#allocation11 + $0x8] sm:$0xff]  }
 0x318   : > { %v1275_v7 = vmax.f32 %v1271_v3, 0.0  ;;  %v1277_v8 = vmax.f32 %v1273_v4, 0.0 }
 0x319   : > { %v1278_v9 = vpack.c.bf16 %v1276_v5, %v1274_v6 }
 0x31a   : > { %v1279_v10 = vpack.c.bf16 %v1277_v8, %v1275_v7 }
 0x31c   : > { %1504 = vmatprep.mubr.bf16.mxu0 %v1279_v10 }
 0x31d   : > { %1505 = vmatmul.mubr.bf16.vlgmr.msra.gmra.mrb[32].mxu0 %v1278_v9 }
 0x3f0   : > { %v1506_v27 = vpop.f32.mrb[32].mxu0 }
 0x3f1   : > { %v1508_v28 = vpop.f32.mrb[33].mxu0  ;;  %v1533_v30 = vmul.f32 %v1506_v27, %v1506_v27 }
 0x3f2   : > { %v1510_v29 = vpop.f32.mrb[34].mxu0  ;;  %v1534_v34 = vmul.f32 %v1508_v28, %v1508_v28 }
 0x3f3   : > { %v1517_v31 = vadd.f32 %v1510_v29, %v1506_v27  ;;  %v1535_v32 = vmul.f32 %v1510_v29, %v1510_v29  ;;  %v1512_v33 = vpop.f32.mrb[35].mxu0 }
 0x3f4   : > { %v1524_v35 = vadd.f32 %v1512_v33, %v1508_v28  ;;  %v1536_v36 = vmul.f32 %v1512_v33, %v1512_v33 }
 0x3f5   : > { %v1518_v37 = vrot.slane %v1517_v31, 4  ;;  %v1537_v38 = vadd.f32 %v1535_v32, %v1533_v30 }
 0x3f6   : > { %v1525_v39 = vrot.slane %v1524_v35, 4  ;;  %v1544_v40 = vadd.f32 %v1536_v36, %v1534_v34 }
 0x3f7   : > { %v1519_v41 = vadd.f32 %v1518_v37, %v1517_v31  ;;  %v1538_v42 = vrot.slane %v1537_v38, 4 }
 0x3f8   : > { %v1526_v43 = vadd.f32 %v1525_v39, %v1524_v35  ;;  %v1545_v44 = vrot.slane %v1544_v40, 4 }
 0x3f9   : > { %v1520_v45 = vrot.slane %v1519_v41, 2  ;;  %v1539_v46 = vadd.f32 %v1538_v42, %v1537_v38  ;;  %v2769_v42 = vld [vmem:[#allocation11 + $0x10] sm:$0xff]  }
 0x3fa   : > { %v1527_v48 = vrot.slane %v1526_v43, 2  ;;  %v1546_v50 = vadd.f32 %v1545_v44, %v1544_v40  ;;  %v2771_v44 = vld [vmem:[#allocation11 + $0x20] sm:$0xff]  }
 0x3fb   : > { %v1521_v51 = vadd.f32 %v1520_v45, %v1519_v41  ;;  %v1540_v52 = vrot.slane %v1539_v46, 2  ;;  %v3117_v41 = vmov 0.0   ;;  %v2772_v45 = vld [vmem:[#allocation11 + $0x28] sm:$0xff]  }
 0x3fc   : > { %v1528_v53 = vadd.f32 %v1527_v48, %v1526_v43  ;;  %v1547_v54 = vrot.slane %v1546_v50, 2  ;;  %2462 = vmatprep.subr.bf16.mxu0 %v3117_v41  ;;  %2482 = vmatprep.subr.bf16.mxu1 %v3117_v41  ;;  %v2770_v43 = vld [vmem:[#allocation11 + $0x18] sm:$0xff]  }
 0x3fd   : > { %v1522_v55 = vrot.slane %v1521_v51, 1  ;;  %v1541_v56 = vadd.f32 %v1540_v52, %v1539_v46  ;;  %2463 = vmatpush3.bf16.msra.mxu0 %v2767_v47  ;;  %v2773_v46 = vld [vmem:[#allocation11 + $0x30] sm:$0xff]   ;;  %v2774_v48 = vld [vmem:[#allocation11 + $0x38] sm:$0xff]   ;;  %2478 = vmatprep.mubr.msk.bf16.mxu0 %vm3118_vm0, %v3117_v41 }
 0x3fe   : > { %v1529_v57 = vrot.slane %v1528_v53, 1  ;;  %v1548_v58 = vadd.f32 %v1547_v54, %v1546_v50  ;;  %2464 = vmatprep.subr.bf16.mxu0 %v3117_v41 }
 0x3ff   : > { %v1523_v59 = vadd.f32 %v1522_v55, %v1521_v51  ;;  %v1542_v60 = vrot.slane %v1541_v56, 1 }
 0x400   : > { %v1530_v61 = vadd.f32 %v1529_v57, %v1528_v53  ;;  %v1549_v62 = vrot.slane %v1548_v58, 1 }
 0x401   : > { %v1531_v63 = vmul.f32 0.0625, %v1523_v59  ;;  %v1543_v0 = vadd.f32 %v1542_v60, %v1541_v56  ;;  %2465 = vmatpush3.bf16.msra.mxu0 %v2768_v49 }
 0x402   : > { %v1532_v1 = vmul.f32 0.0625, %v1530_v61  ;;  %v1550_v2 = vadd.f32 %v1549_v62, %v1548_v58  ;;  %2466 = vmatprep.subr.bf16.mxu0 %v3117_v41 }
 0x403   : > { %v1551_v3 = vmul.f32 0.0625, %v1543_v0  ;;  %v1553_v4 = vmul.f32 %v1531_v63, %v1531_v63  ;;  %v1557_v5 = vsub.f32 %v1506_v27, %v1531_v63  ;;  %v1559_v6 = vsub.f32 %v1510_v29, %v1531_v63 }
 0x404   : > { %v1552_v7 = vmul.f32 0.0625, %v1550_v2  ;;  %v1554_v8 = vmul.f32 %v1532_v1, %v1532_v1  ;;  %v1560_v9 = vsub.f32 %v1512_v33, %v1532_v1  ;;  %v1558_v10 = vsub.f32 %v1508_v28, %v1532_v1 }
 0x405   : > { %v1555_v11 = vsub.f32 %v1551_v3, %v1553_v4  ;;  %2467 = vmatpush3.bf16.msra.mxu0 %v2769_v42 }
 0x406   : > { %v1556_v12 = vsub.f32 %v1552_v7, %v1554_v8  ;;  %2468 = vmatprep.subr.bf16.mxu0 %v3117_v41 }
 0x407   : > { %v1561_v13 = vadd.f32 1e-05, %v1555_v11 }
 0x408   : > { %v1562_v14 = vadd.f32 1e-05, %v1556_v12 }
 0x409   : > { %2787 = vrsqrt.f32 %v1561_v13  ;;  %2469 = vmatpush3.bf16.msra.mxu0 %v2770_v43 }
 0x40a   : > { %2789 = vrsqrt.f32 %v1562_v14  ;;  %2470 = vmatprep.subr.bf16.mxu0 %v3117_v41 }
 0x40d   : > { %2471 = vmatpush3.bf16.msra.mxu0 %v2771_v44 }
 0x40e   : > { %2472 = vmatprep.subr.bf16.mxu0 %v3117_v41 }
 0x411   : > { %2473 = vmatpush3.bf16.msra.mxu0 %v2772_v45 }
 0x412   : > { %2474 = vmatprep.subr.bf16.mxu0 %v3117_v41 }
 0x413   : > { %v2788_v18 = vpop.eup %2787 }
 0x414   : > { %v2790_v20 = vpop.eup %2789  ;;  %v1565_v21 = vmul.f32 %v2788_v18, %v1557_v5  ;;  %v1567_v22 = vmul.f32 %v2788_v18, %v1559_v6 }
 0x415   : > { %v1568_v24 = vmul.f32 %v2790_v20, %v1560_v9  ;;  %v1566_v25 = vmul.f32 %v2790_v20, %v1558_v10  ;;  %2475 = vmatpush3.bf16.msra.mxu0 %v2773_v46  ;;  %v2776_v20 = vld [vmem:[#allocation13 + $0x8] sm:$0xff]  }
 0x416   : > { %v1580_v27 = vmul.f32 %v1573_v17, %v1565_v21  ;;  %v1582_v28 = vmul.f32 %v1573_v17, %v1567_v22  ;;  %2476 = vmatprep.subr.bf16.mxu0 %v3117_v41  ;;  %v2777_v21 = vld [vmem:[#allocation13 + $0x10] sm:$0xff]   ;;  %v2778_v22 = vld [vmem:[#allocation13 + $0x18] sm:$0xff]  }
 0x417   : > { %v1583_v29 = vmul.f32 %v1577_v19, %v1568_v24  ;;  %v1581_v30 = vmul.f32 %v1577_v19, %v1566_v25  ;;  %v2775_v19 = vld [vmem:[#allocation13] sm:$0xff]   ;;  %v2780_v24 = vld [vmem:[#allocation13 + $0x28] sm:$0xff]   ;;  %v2781_v25 = vld [vmem:[#allocation13 + $0x30] sm:$0xff]  }
 0x418   : > { %v1597_v31 = vadd.f32 %v1588_v23, %v1582_v28  ;;  %v1595_v32 = vadd.f32 %v1588_v23, %v1580_v27  ;;  %v2779_v23 = vld [vmem:[#allocation13 + $0x20] sm:$0xff]  }
 0x419   : > { %v1596_v33 = vadd.f32 %v1592_v26, %v1581_v30  ;;  %v1598_v34 = vadd.f32 %v1592_v26, %v1583_v29  ;;  %2477 = vmatpush3.bf16.msra.mxu0 %v2774_v48  ;;  %v2782_v26 = vld [vmem:[#allocation13 + $0x38] sm:$0xff]  }
 0x41a   : > { %v1599_v35 = vmax.f32 %v1595_v32, 0.0  ;;  %v1601_v36 = vmax.f32 %v1597_v31, 0.0 }
 0x41b   : > { %v1600_v37 = vmax.f32 %v1596_v33, 0.0  ;;  %v1602_v38 = vmax.f32 %v1598_v34, 0.0 }
 0x41c   : > { %v1603_v39 = vpack.c.bf16 %v1601_v36, %v1599_v35 }
 0x41d   : > { %v1604_v40 = vpack.c.bf16 %v1602_v38, %v1600_v37 }
 0x41f   : > { %1765 = vmatprep.mubr.bf16.mxu1 %v1604_v40 }
 0x420   : > { %1766 = vmatmul.mubr.bf16.vlgmr.msra.gmra.mrb[4].mxu1 %v1603_v39 }
 0x421   : > { %2498 = vmatprep.mubr.msk.bf16.mxu1 %vm3118_vm0, %v3117_v41  ;;  %2483 = vmatpush3.bf16.msra.mxu1 %v2775_v19 }
 0x422   : > { %2484 = vmatprep.subr.bf16.mxu1 %v3117_v41 }
 0x425   : > { %2485 = vmatpush3.bf16.msra.mxu1 %v2776_v20 }
 0x426   : > { %2486 = vmatprep.subr.bf16.mxu1 %v3117_v41 }
 0x429   : > { %2487 = vmatpush3.bf16.msra.mxu1 %v2777_v21 }
 0x42a   : > { %2488 = vmatprep.subr.bf16.mxu1 %v3117_v41 }
 0x42d   : > { %2489 = vmatpush3.bf16.msra.mxu1 %v2778_v22 }
 0x42e   : > { %2490 = vmatprep.subr.bf16.mxu1 %v3117_v41 }
 0x431   : > { %2491 = vmatpush3.bf16.msra.mxu1 %v2779_v23 }
 0x432   : > { %2492 = vmatprep.subr.bf16.mxu1 %v3117_v41 }
 0x435   : > { %2493 = vmatpush3.bf16.msra.mxu1 %v2780_v24 }
 0x436   : > { %2494 = vmatprep.subr.bf16.mxu1 %v3117_v41 }
 0x439   : > { %2495 = vmatpush3.bf16.msra.mxu1 %v2781_v25 }
 0x43a   : > { %2496 = vmatprep.subr.bf16.mxu1 %v3117_v41 }
 0x43d   : > { %2497 = vmatpush3.bf16.msra.mxu1 %v2782_v26 }
 0x4f3   : > { %v2438_v50 = vpop.f32.mrb[4].mxu1 }
 0x4f4   : > { %v2439_v51 = vpop.f32.mrb[5].mxu1 }
 0x4f5   : > { %v2440_v52 = vadd.f32 %v2439_v51, %v2438_v50  ;;  %v2441_v53 = vpop.f32.mrb[6].mxu1 }
 0x4f6   : > { %v2442_v54 = vpop.f32.mrb[7].mxu1 }
 0x4f7   : > { %v2443_v55 = vadd.f32 %v2442_v54, %v2441_v53  ;;  %v1782_v56 = vmul.f32 %v2440_v52, %v2440_v52 }
 0x4f9   : > { %v1774_v57 = vadd.f32 %v2443_v55, %v2440_v52  ;;  %v1783_v58 = vmul.f32 %v2443_v55, %v2443_v55 }
 0x4fb   : > { %v1775_v59 = vrot.slane %v1774_v57, 4  ;;  %v1784_v60 = vadd.f32 %v1783_v58, %v1782_v56  ;;  %v2401_v58 = vld [vmem:[%s3725_s1] ss:$0 sm:$0xff] }
 0x4fd   : > { %v1776_v61 = vadd.f32 %v1775_v59, %v1774_v57  ;;  %v1785_v62 = vrot.slane %v1784_v60, 4 }
 0x4ff   : > { %v1777_v63 = vrot.slane %v1776_v61, 2  ;;  %v1786_v0 = vadd.f32 %v1785_v62, %v1784_v60 }
 0x501   : > { %v1778_v1 = vadd.f32 %v1777_v63, %v1776_v61  ;;  %v1787_v2 = vrot.slane %v1786_v0, 2 }
 0x503   : > { %v1779_v3 = vrot.slane %v1778_v1, 1  ;;  %v1788_v4 = vadd.f32 %v1787_v2, %v1786_v0 }
 0x505   : > { %v1780_v5 = vadd.f32 %v1779_v3, %v1778_v1  ;;  %v1789_v6 = vrot.slane %v1788_v4, 1 }
 0x507   : > { %v1781_v7 = vmul.f32 0.0625, %v1780_v5  ;;  %v1790_v8 = vadd.f32 %v1789_v6, %v1788_v4 }
 0x509   : > { %v1791_v9 = vmul.f32 0.0625, %v1790_v8  ;;  %v1792_v10 = vmul.f32 %v1781_v7, %v1781_v7  ;;  %v1795_v11 = vsub.f32 %v2443_v55, %v1781_v7  ;;  %v1794_v12 = vsub.f32 %v2440_v52, %v1781_v7  ;;  %v2400_v55 = vld [vmem:[%s3724_s25] ss:$0 sm:$0xff]  ;;  %s3119_s25 = smov [#allocation14]  }
 0x50b   : > { %v1793_v13 = vsub.f32 %v1791_v9, %v1792_v10 }
 0x50d   : > { %v1796_v14 = vadd.f32 1e-05, %v1793_v13 }
 0x50f   : > { %2791 = vrsqrt.f32 %v1796_v14 }
 0x519   : > { %v2792_v15 = vpop.eup %2791 }
 0x51a   : > { %v1799_v16 = vmul.f32 %v2792_v15, %v1795_v11  ;;  %v1798_v17 = vmul.f32 %v2792_v15, %v1794_v12 }
 0x51c   : > { %v1802_v18 = vpack.c.bf16 %v1799_v16, %v1798_v17  ;;  %1800 = vst [vmem:[%s3555_s5] sm:$0xff] %v1798_v17  ;;  %1801 = vst [vmem:[%s3555_s5 + $0x8] sm:$0xff] %v1799_v16  ;;  %s2997_s5 = sshll.u32 %s3119_s25, 4  ;;  %s2998_s5 = int_to_ptr.vmem [resolvable:$false] %s2997_s5 }
 0x51d   : > { %s2999_s27 = scalar_lea.vmem %s2998_s5, 512  ;;  %p3000_p11 = scmp.lt.s32.totalorder %s3573_s23, %s2998_s5 }
 0x51e   : > { %2479 = vmatmul.mubr.bf16.vlgmr.msra.gmra.mrb[36].mxu0 %v1802_v18  ;;  %p3001_p12 = scmp.lt.s32.totalorder %s2999_s27, %s2993_s7 }
 0x520   : > { %p3002_p13 = por %p3001_p12, %p3000_p11 }
 0x522   : > { %p3003_p8 = pnand %p3002_p13, %p2996_p1 }
 0x5f1   : > { %v1901_v27 = vpop.f32.mrb[36].mxu0 }
 0x5f2   : > { %v2480_v28 = vpop.f32.mrb[37].mxu0  ;;  %v1918_v30 = vmul.f32 %v1901_v27, %v1901_v27 }
 0x5f3   : > { %v1904_v29 = vpop.f32.mrb[38].mxu0 }
 0x5f4   : > { %v1910_v31 = vadd.f32 %v1904_v29, %v1901_v27  ;;  %v1919_v32 = vmul.f32 %v1904_v29, %v1904_v29  ;;  %v2481_v33 = vpop.f32.mrb[39].mxu0 }
 0x5f6   : > { %v1911_v34 = vrot.slane %v1910_v31, 4  ;;  %v1920_v35 = vadd.f32 %v1919_v32, %v1918_v30 }
 0x5f8   : > { %v1912_v36 = vadd.f32 %v1911_v34, %v1910_v31  ;;  %v1921_v37 = vrot.slane %v1920_v35, 4 }
 0x5fa   : > { %v1913_v38 = vrot.slane %v1912_v36, 2  ;;  %v1922_v39 = vadd.f32 %v1921_v37, %v1920_v35 }
 0x5fc   : > { %v1914_v40 = vadd.f32 %v1913_v38, %v1912_v36  ;;  %v1923_v47 = vrot.slane %v1922_v39, 2 }
 0x5fe   : > { %v1915_v49 = vrot.slane %v1914_v40, 1  ;;  %v1924_v42 = vadd.f32 %v1923_v47, %v1922_v39 }
 0x600   : > { %v1916_v41 = vadd.f32 %v1915_v49, %v1914_v40  ;;  %v1925_v43 = vrot.slane %v1924_v42, 1 }
 0x602   : > { %v1917_v44 = vmul.f32 0.0625, %v1916_v41  ;;  %v1926_v45 = vadd.f32 %v1925_v43, %v1924_v42 }
 0x604   : > { %v1927_v46 = vmul.f32 0.0625, %v1926_v45  ;;  %v1928_v48 = vmul.f32 %v1917_v44, %v1917_v44  ;;  %v1930_v50 = vsub.f32 %v1901_v27, %v1917_v44  ;;  %v1931_v51 = vsub.f32 %v1904_v29, %v1917_v44 }
 0x606   : > { %v1929_v52 = vsub.f32 %v1927_v46, %v1928_v48 }
 0x608   : > { %v1932_v53 = vadd.f32 1e-05, %v1929_v52 }
 0x60a   : > { %2793 = vrsqrt.f32 %v1932_v53 }
 0x614   : > { %v2794_v54 = vpop.eup %2793 }
 0x615   : > { %v1934_v56 = vmul.f32 %v2794_v54, %v1930_v50  ;;  %v1935_v57 = vmul.f32 %v2794_v54, %v1931_v51 }
 0x617   : > { %v1942_v59 = vmul.f32 %v2400_v55, %v1934_v56  ;;  %v1943_v60 = vmul.f32 %v2400_v55, %v1935_v57 }
 0x619   : > { %v1951_v61 = vadd.f32 %v2401_v58, %v1943_v60  ;;  %v1950_v62 = vadd.f32 %v2401_v58, %v1942_v59 }
 0x61b   : > { %v1952_v63 = vmax.f32 %v1950_v62, 0.0  ;;  %v1953_v0 = vmax.f32 %v1951_v61, 0.0 }
 0x61d   : > { %v1954_v1 = vpack.c.bf16 %v1953_v0, %v1952_v63 }
 0x61f   : > { %2499 = vmatmul.mubr.bf16.vlgmr.msra.gmra.mrb[8].mxu1 %v1954_v1 }
 0x620   : > { %3006 = shalt.err (!%p3003_p8)
}
 0x621   : > { %s3007_s6 = scalar_lea.hbm %s3581_s29, 256  ;;  %s3011_s15 = scalar_lea.hbm %s3726_s17, 512 }
 0x622   : > { %p3008_p7 = scmp.ne.s32.totalorder %s3581_s29, %s3007_s6  ;;  %p3012_p3 = scmp.lt.u32.totalorder %s3581_s29, %s3726_s17 }
 0x623   : > { %p3013_p0 = scmp.lt.u32.totalorder %s3011_s15, %s3007_s6  ;;  %p3015_p6 = scmp.lt.u32.totalorder %s3007_s6, %s3581_s29 }
 0x624   : > { %p3009_p9 = pnand %p3008_p7, %p3727_p5 }
 0x625   : > { %p3014_p2 = por %p3013_p0, %p3012_p3 }
 0x626   : > { %p3010_p4 = pneg %p3009_p9 }
 0x627   : > { %p3016_p10 = por %p3015_p6, %p3014_p2 }
 0x629   : > { %p3017_p1 = pnand %p3016_p10, %p3010_p4 }
 0x62b   : > { %3020 = shalt.err (!%p3017_p1)
}
 0x62c   : > { %s3692_s7 = smov 128   ;;  %s3121_s27 = smov 8  }
 0x62d   : > { %2528 = dma.vmem_to_hbm [thread:$0]  (%p3727_p5), %s3573_s23, 256, %s3581_s29, %s2070_s30, %s3692_s7, %s3692_s7, %s3121_s27  }
 0x62e   : > { %s3728_s16 = sld [smem:[#allocation29_spill]]  ;;  %s610_s15 = scalar_lea.vmem [#allocation15], %s2286_s22 }
 0x62f   : > { %s2104_s25 = sshll.u32 %s610_s15, 4  ;;  %s3729_s30 = sld [smem:[#allocation31_spill]]  ;;  %s3615_s25 = int_to_ptr.vmem [resolvable:$true] %s2104_s25 }
 0x630   : > { %s2075_s22 = scalar_lea.sflag [#allocation16], %s3475_s13  ;;  %s3021_s1 = scalar_lea.vmem %s3615_s25, 256 }
 0x631   : > { %p3022_p11 = scmp.ne.s32.totalorder %s3615_s25, %s3021_s1  ;;  %s3122_s6 = smov [#allocation15]  }
 0x633   : > { %p3023_p12 = pnand %p3022_p11, %p3727_p5 }
 0x634   : > { %v2402_v2 = vld [vmem:[%s3728_s16] ss:$0 sm:$0xff]  ;;  %s3025_s16 = sshll.u32 %s3122_s6, 4  ;;  %s3026_s16 = int_to_ptr.vmem [resolvable:$false] %s3025_s16 }
 0x635   : > { %s3622_s5 = scalar_lea.hbm %s3729_s30, %s2420_s28  ;;  %p3024_p13 = pneg %p3023_p12 }
 0x636   : > { %s3027_s7 = scalar_lea.vmem %s3026_s16, 512  ;;  %p3028_p8 = scmp.lt.s32.totalorder %s3615_s25, %s3026_s16 }
 0x637   : > { %p3029_p7 = scmp.lt.s32.totalorder %s3027_s7, %s3021_s1 }
 0x639   : > { %p3030_p9 = por %p3029_p7, %p3028_p8 }
 0x63b   : > { %p3031_p4 = pnand %p3030_p9, %p3024_p13 }
 0x6f2   : > { %v2060_v3 = vpop.f32.mrb[8].mxu1 }
 0x6f3   : > { %v2061_v4 = vadd.f32 %v2402_v2, %v2060_v3  ;;  %v2500_v5 = vpop.f32.mrb[9].mxu1 }
 0x6f4   : > { %v2063_v6 = vpop.f32.mrb[10].mxu1 }
 0x6f5   : > { %2067 = vst [vmem:[%s610_s15] sm:$0xff] %v2061_v4  ;;  %v2064_v7 = vadd.f32 %v2402_v2, %v2063_v6  ;;  %v2501_v8 = vpop.f32.mrb[11].mxu1 }
 0x6f7   : > { %2068 = vst [vmem:[%s610_s15 + $0x8] sm:$0xff] %v2064_v7 }
 0x6f8   : > { %3034 = shalt.err (!%p3031_p4)
}
 0x6f9   : > { %s3035_s24 = scalar_lea.hbm %s3622_s5, 256  ;;  %s3039_s23 = scalar_lea.hbm %s3729_s30, 512 }
 0x6fa   : > { %p3036_p3 = scmp.ne.s32.totalorder %s3622_s5, %s3035_s24  ;;  %p3040_p6 = scmp.lt.u32.totalorder %s3622_s5, %s3729_s30 }
 0x6fb   : > { %p3041_p10 = scmp.lt.u32.totalorder %s3039_s23, %s3035_s24  ;;  %p3043_p11 = scmp.lt.u32.totalorder %s3035_s24, %s3622_s5 }
 0x6fc   : > { %p3037_p0 = pnand %p3036_p3, %p3727_p5 }
 0x6fd   : > { %p3042_p1 = por %p3041_p10, %p3040_p6 }
 0x6fe   : > { %p3038_p2 = pneg %p3037_p0 }
 0x6ff   : > { %p3044_p12 = por %p3043_p11, %p3042_p1 }
 0x701   : > { %p3045_p13 = pnand %p3044_p12, %p3038_p2 }
 0x703   : > { %3048 = shalt.err (!%p3045_p13)
}
 0x704   : > { %s3730_s7 = smov 128  }
 0x705   : > { %2529 = dma.vmem_to_hbm [thread:$0]  (%p3727_p5), %s3615_s25, 256, %s3622_s5, %s2075_s22, %s3730_s7, %s3730_s7, %s3121_s27  }
 0x706 PF: > { %s2119_s1 = sand.u32 1, %s3091_s18   ;;  %p3731_p8 = scmp.ne.s32.totalorder %s3713_s11, 0 }
 0x707   : > { %p3732_p7 = scmp.ge.s32.totalorder %s3103_s21, 2  ;;  %s2120_s16 = scalar_lea.sflag [#allocation4], %s2119_s1 }
 0x709   : > { %p2556_p9 = pnand %p3732_p7, %p3731_p8 }
 0x70b   : > { %3082 = dma.done.wait (!%p2556_p9), %s2120_s16, 256  }
 0x70c   : > { %3084 = vsyncadd (!%p2556_p9), %s2120_s16, 4294967040  ;;  %s2129_s10 = scalar_lea.sflag [#allocation16], %s2119_s1 }
 0x70d   : > { %3086 = dma.done.wait (!%p2556_p9), %s2129_s10, 256  }
 0x70e   : > { %3088 = vsyncadd (!%p2556_p9), %s2129_s10, 4294967040  ;;  %p35_p5 = scmp.ge.s32.totalorder %s3393_s26, 4   ;;  %s3733_s18 = smov %s3095_s19 }
 0x70f   : > { %s3734_s19 = smov %s3099_s20  ;;  %s3735_s20 = smov %s3404_s14 }
 0x710   : > { %s3736_s21 = smov %s3393_s26  ;;  %37 = sbr.rel (!%p35_p5) target bundleno = 20 (0x14), region = 162 }
 0x717   :  { %2134 = vsyncpa [#allocation3], 1 }
 0x718   :  { %2136 = vsyncpa [#allocation3 + $0x1], 1 }
 0x719   :  { %2137 = vsyncpa [#allocation6], 1 }
 0x71a   :  { %2138 = vsyncpa [#allocation9], 1 }
 0x71b   :  { %2139 = vsyncpa [#allocation12], 1 }
 0x71c   :  { %2140 = vsyncpa [#allocation4], 1 }
 0x71d   :  { %2142 = vsyncpa [#allocation4 + $0x1], 1 }
 0x71e   :  { %2143 = vsyncpa [#allocation16], 1 }
 0x71f   :  { %2145 = vsyncpa [#allocation16 + $0x1], 1 }

</bundles_post_ra>
